<compile_context>
chip_gen: v5e
topology: v5e:2x2
jax: 0.10.0
libtpu: 0.0.40
codegen_flags: <defaults>
</compile_context>

<pallas_src>
import math
import functools

import jax
import jax.numpy as jnp
from jax.experimental import pallas as pl
from jax.experimental.pallas import tpu as pltpu


# ----------------------------------------------------------------------------
# Fused forward kernel (single program, whole batch)
# ----------------------------------------------------------------------------

def _bert_forward_kernel(word_ref, pos_ref, type_ref, mask_ref,
                         emb_g_ref, emb_b_ref,
                         wqkv_ref, bqkv_ref, wo_ref, bo_ref, ln1g_ref, ln1b_ref,
                         w1_ref, b1_ref, w2_ref, b2_ref, ln2g_ref, ln2b_ref,
                         poolw_ref, poolb_ref, fcw_ref, fcb_ref,
                         out_ref, *, num_layers, heads, eps):
    B, S, H = word_ref.shape
    N = B * S
    hd = H // heads
    scale = 1.0 / math.sqrt(hd)
    bf16 = jnp.bfloat16

    def layer_norm(x, g, b):
        mu = jnp.mean(x, axis=-1, keepdims=True)
        xc = x - mu
        var = jnp.mean(xc * xc, axis=-1, keepdims=True)
        return xc * jax.lax.rsqrt(var + eps) * g + b

    def split_heads(x):
        # (N, H) -> (heads*B, S, hd), flattened batch index n = h*B + b
        return jnp.concatenate(
            [x[:, h * hd:(h + 1) * hd].reshape(B, S, hd) for h in range(heads)],
            axis=0)

    def merge_heads(x):
        # (heads*B, S, hd) -> (N, H)
        return jnp.concatenate(
            [x[h * B:(h + 1) * B].reshape(N, hd) for h in range(heads)],
            axis=-1)

    # --- embeddings: word + position + token_type, then LayerNorm ------------
    e = (word_ref[...] + pos_ref[...] + type_ref[...]).reshape(N, H)
    h = layer_norm(e, emb_g_ref[...], emb_b_ref[...])                 # (N, H) f32

    # additive attention mask tiled once to the (head*batch) layout
    mask_hb = jnp.tile(mask_ref[...], (heads, 1, 1))                  # (heads*B, 1, S)

    for li in range(num_layers):
        # --- fused QKV projection: bf16 operands into the MXU, f32 accum ----
        qkv = jnp.dot(h.astype(bf16), wqkv_ref[li],
                      preferred_element_type=jnp.float32) + bqkv_ref[li]   # (N, 3H)
        q = split_heads(qkv[:, 0 * H:1 * H]).astype(bf16)
        k = split_heads(qkv[:, 1 * H:2 * H]).astype(bf16)
        v = split_heads(qkv[:, 2 * H:3 * H]).astype(bf16)

        # --- attention: one batched dot_general over the (head*batch) axis --
        s = jnp.einsum('nqd,nkd->nqk', q, k,
                       preferred_element_type=jnp.float32) * scale + mask_hb
        s = s - jnp.max(s, axis=-1, keepdims=True)
        p = jnp.exp(s)
        # approx reciprocal keeps the softmax division on the EUP slot
        p = p * pl.reciprocal(jnp.sum(p, axis=-1, keepdims=True), approx=True)
        ctx = jnp.einsum('nqk,nkd->nqd', p.astype(bf16), v,
                         preferred_element_type=jnp.float32)
        ctx = merge_heads(ctx)                                         # (N, H) f32

        # --- output projection + residual + LayerNorm ------------------------
        attn = jnp.dot(ctx.astype(bf16), wo_ref[li],
                       preferred_element_type=jnp.float32) + bo_ref[li]
        h = layer_norm(h + attn, ln1g_ref[li], ln1b_ref[li])

        # --- feed-forward + residual + LayerNorm -----------------------------
        inter = jnp.dot(h.astype(bf16), w1_ref[li],
                        preferred_element_type=jnp.float32) + b1_ref[li]
        # TODO(synk): HF BERT uses exact (erf) GELU; tanh approximation kept
        # for robust Mosaic lowering (tiny numeric difference only).
        inter = 0.5 * inter * (1.0 + jnp.tanh(
            0.7978845608028654 * (inter + 0.044715 * inter * inter * inter)))
        ffn = jnp.dot(inter.astype(bf16), w2_ref[li],
                      preferred_element_type=jnp.float32) + b2_ref[li]
        h = layer_norm(h + ffn, ln2g_ref[li], ln2b_ref[li])

    # --- pooler on all CLS rows at once: tanh((B,H)@(H,H)) -------------------
    cls = jnp.concatenate([h[b * S:b * S + 1, :] for b in range(B)], axis=0)
    pooled = jnp.tanh(jnp.dot(cls.astype(bf16), poolw_ref[...],
                              preferred_element_type=jnp.float32) + poolb_ref[...])

    # --- dropout: identity in eval mode --------------------------------------
    # TODO(synk): training-mode RNG dropout not implemented (eval semantics).

    # --- fc into a lane-dense (128-wide, zero-padded) output block -----------
    logits = jnp.dot(pooled.astype(bf16), fcw_ref[...],
                     preferred_element_type=jnp.float32) + fcb_ref[...]     # (B, 128)
    out_ref[...] = logits


# ----------------------------------------------------------------------------
# Parameter construction (deterministic, synthetic mini-BERT)
# ----------------------------------------------------------------------------

def init_params(key, *, vocab, hidden, layers, heads, intermediate, max_pos,
                type_vocab, output_size):
    std = 0.02
    bf16 = jnp.bfloat16

    def nrm(k, shape):
        return jax.random.normal(k, shape, jnp.float32) * std

    keys = jax.random.split(key, 4 + layers)
    params = {
        "cfg": dict(hidden=hidden, heads=heads, layers=layers,
                    intermediate=intermediate, output=output_size),
        "emb": {
            "word": nrm(keys[0], (vocab, hidden)),
            "pos": nrm(keys[1], (max_pos, hidden)),
            "type": nrm(keys[2], (type_vocab, hidden)),
            "ln_g": jnp.ones((hidden,), jnp.float32),
            "ln_b": jnp.zeros((hidden,), jnp.float32),
        },
    }

    wqkv, wo, w1, w2 = [], [], [], []
    for li in range(layers):
        lk = jax.random.split(keys[4 + li], 6)
        # Q|K|V concatenated into a single (H, 3H) projection weight.
        wqkv.append(jnp.concatenate(
            [nrm(lk[0], (hidden, hidden)),
             nrm(lk[1], (hidden, hidden)),
             nrm(lk[2], (hidden, hidden))], axis=1))
        wo.append(nrm(lk[3], (hidden, hidden)))
        w1.append(nrm(lk[4], (hidden, intermediate)))
        w2.append(nrm(lk[5], (intermediate, hidden)))

    L, H, I = layers, hidden, intermediate
    params.update({
        # Matmul weights stored in bf16 (MXU-native, halves VMEM); biases and
        # LayerNorm params stay f32 for f32 elementwise math.
        "wqkv": jnp.stack(wqkv).astype(bf16),                 # (L, H, 3H)
        "bqkv": jnp.zeros((L, 1, 3 * H), jnp.float32),
        "wo": jnp.stack(wo).astype(bf16),
        "bo": jnp.zeros((L, 1, H), jnp.float32),
        "ln1_g": jnp.ones((L, 1, H), jnp.float32),
        "ln1_b": jnp.zeros((L, 1, H), jnp.float32),
        "w1": jnp.stack(w1).astype(bf16),
        "b1": jnp.zeros((L, 1, I), jnp.float32),
        "w2": jnp.stack(w2).astype(bf16),
        "b2": jnp.zeros((L, 1, H), jnp.float32),
        "ln2_g": jnp.ones((L, 1, H), jnp.float32),
        "ln2_b": jnp.zeros((L, 1, H), jnp.float32),
    })
    pk = jax.random.split(keys[3], 2)
    params["pool_w"] = nrm(pk[0], (hidden, hidden)).astype(bf16)
    params["pool_b"] = jnp.zeros((hidden,), jnp.float32)
    params["fc_w"] = nrm(pk[1], (hidden, output_size))        # padded in wrapper
    params["fc_b"] = jnp.zeros((output_size,), jnp.float32)
    return params


# ----------------------------------------------------------------------------
# BERTClass.forward(ids, mask)
# ----------------------------------------------------------------------------

def bert_class_forward(params, ids, mask):
    B, S = ids.shape
    cfg = params["cfg"]
    H, heads = cfg["hidden"], cfg["heads"]
    L, I, O = cfg["layers"], cfg["intermediate"], cfg["output"]
    O_PAD = 128   # lane-dense output width

    emb = params["emb"]
    # Embedding gathers stay in XLA (glue); sum + LayerNorm happen in-kernel.
    word = emb["word"][ids]                                   # (B, S, H)
    pos = emb["pos"][:S].reshape(1, S, H)
    tok_type = emb["type"][0].reshape(1, 1, H)                # token_type_ids == 0
    # additive attention mask: 0 for keep, -10000 for pad (HF BERT convention)
    add_mask = ((1.0 - mask.astype(jnp.float32)) * -10000.0).reshape(B, 1, S)

    # zero-pad fc weight/bias to 128 lanes so the kernel's output store is
    # unmasked; the padding columns produce zeros we slice off afterwards.
    fc_w_pad = jnp.zeros((H, O_PAD), jnp.bfloat16).at[:, :O].set(
        params["fc_w"].astype(jnp.bfloat16))
    fc_b_pad = jnp.zeros((1, O_PAD), jnp.float32).at[:, :O].set(
        params["fc_b"].reshape(1, O))

    kernel = functools.partial(_bert_forward_kernel,
                               num_layers=L, heads=heads, eps=1e-12)

    n_inputs = 22
    in_specs = [pl.BlockSpec(memory_space=pltpu.MemorySpace.VMEM)
                for _ in range(n_inputs)]

    out = pl.pallas_call(
        kernel,
        out_shape=jax.ShapeDtypeStruct((B, O_PAD), jnp.float32),
        in_specs=in_specs,
        out_specs=pl.BlockSpec(memory_space=pltpu.MemorySpace.VMEM),
        compiler_params=pltpu.CompilerParams(vmem_limit_bytes=32 * 1024 * 1024),
    )(word, pos, tok_type, add_mask,
      emb["ln_g"].reshape(1, H), emb["ln_b"].reshape(1, H),
      params["wqkv"], params["bqkv"], params["wo"], params["bo"],
      params["ln1_g"], params["ln1_b"],
      params["w1"], params["b1"], params["w2"], params["b2"],
      params["ln2_g"], params["ln2_b"],
      params["pool_w"], params["pool_b"].reshape(1, H),
      fc_w_pad, fc_b_pad)

    return out[:, :O]


# ----------------------------------------------------------------------------
# main
# ----------------------------------------------------------------------------

if __name__ == "__main__":
    B, S = 2, 8
    VOCAB, HIDDEN, LAYERS, HEADS, INTER = 50, 32, 2, 4, 64
    MAX_POS, TYPE_VOCAB, OUTPUT_SIZE = 16, 2, 4

    key = jax.random.PRNGKey(0)
    pkey, ikey = jax.random.split(key)

    params = init_params(pkey, vocab=VOCAB, hidden=HIDDEN, layers=LAYERS,
                         heads=HEADS, intermediate=INTER, max_pos=MAX_POS,
                         type_vocab=TYPE_VOCAB, output_size=OUTPUT_SIZE)

    ids = jax.random.randint(ikey, (B, S), 0, VOCAB, dtype=jnp.int32)
    lengths = jnp.array([S, S - 2], dtype=jnp.int32)
    mask = (jnp.arange(S)[None, :] < lengths[:, None]).astype(jnp.int32)  # (B, S)

    out = bert_class_forward(params, ids, mask)
    out = jax.block_until_ready(out)

    assert out.shape == (B, OUTPUT_SIZE), out.shape
    assert bool(jnp.all(jnp.isfinite(out)))
    print("KERNEL_OK")
</pallas_src>

<mosaic_0001>
module attributes {stable_mosaic.version = 11 : i64} {
  func.func @_bert_forward_kernel(%arg0: memref<2x8x32xf32, #tpu.memory_space<vmem>>, %arg1: memref<1x8x32xf32, #tpu.memory_space<vmem>>, %arg2: memref<1x1x32xf32, #tpu.memory_space<vmem>>, %arg3: memref<2x1x8xf32, #tpu.memory_space<vmem>>, %arg4: memref<1x32xf32, #tpu.memory_space<vmem>>, %arg5: memref<1x32xf32, #tpu.memory_space<vmem>>, %arg6: memref<2x32x96xbf16, #tpu.memory_space<vmem>>, %arg7: memref<2x1x96xf32, #tpu.memory_space<vmem>>, %arg8: memref<2x32x32xbf16, #tpu.memory_space<vmem>>, %arg9: memref<2x1x32xf32, #tpu.memory_space<vmem>>, %arg10: memref<2x1x32xf32, #tpu.memory_space<vmem>>, %arg11: memref<2x1x32xf32, #tpu.memory_space<vmem>>, %arg12: memref<2x32x64xbf16, #tpu.memory_space<vmem>>, %arg13: memref<2x1x64xf32, #tpu.memory_space<vmem>>, %arg14: memref<2x64x32xbf16, #tpu.memory_space<vmem>>, %arg15: memref<2x1x32xf32, #tpu.memory_space<vmem>>, %arg16: memref<2x1x32xf32, #tpu.memory_space<vmem>>, %arg17: memref<2x1x32xf32, #tpu.memory_space<vmem>>, %arg18: memref<32x32xbf16, #tpu.memory_space<vmem>>, %arg19: memref<1x32xf32, #tpu.memory_space<vmem>>, %arg20: memref<32x128xbf16, #tpu.memory_space<vmem>>, %arg21: memref<1x128xf32, #tpu.memory_space<vmem>>, %arg22: memref<2x128xf32, #tpu.memory_space<vmem>>) attributes {dimension_semantics = [], scalar_prefetch = 0 : i64, scratch_operands = 0 : i64, tpu.core_type = #tpu.core_type<tc>} {
    %c0 = arith.constant 0 : index
    %c0_0 = arith.constant 0 : index
    %c0_1 = arith.constant 0 : index
    %0 = vector.load %arg0[%c0, %c0_0, %c0_1] : memref<2x8x32xf32, #tpu.memory_space<vmem>>, vector<2x8x32xf32>
    %c0_2 = arith.constant 0 : index
    %c0_3 = arith.constant 0 : index
    %c0_4 = arith.constant 0 : index
    %1 = vector.load %arg1[%c0_2, %c0_3, %c0_4] : memref<1x8x32xf32, #tpu.memory_space<vmem>>, vector<1x8x32xf32>
    %2 = vector.broadcast %1 : vector<1x8x32xf32> to vector<2x8x32xf32>
    %3 = arith.addf %0, %2 : vector<2x8x32xf32>
    %c0_5 = arith.constant 0 : index
    %c0_6 = arith.constant 0 : index
    %c0_7 = arith.constant 0 : index
    %4 = vector.load %arg2[%c0_5, %c0_6, %c0_7] : memref<1x1x32xf32, #tpu.memory_space<vmem>>, vector<1x1x32xf32>
    %5 = vector.broadcast %4 : vector<1x1x32xf32> to vector<2x8x32xf32>
    %6 = arith.addf %3, %5 : vector<2x8x32xf32>
    %7 = vector.shape_cast %6 : vector<2x8x32xf32> to vector<16x32xf32>
    %c0_8 = arith.constant 0 : index
    %c0_9 = arith.constant 0 : index
    %8 = vector.load %arg4[%c0_8, %c0_9] : memref<1x32xf32, #tpu.memory_space<vmem>>, vector<1x32xf32>
    %c0_10 = arith.constant 0 : index
    %c0_11 = arith.constant 0 : index
    %9 = vector.load %arg5[%c0_10, %c0_11] : memref<1x32xf32, #tpu.memory_space<vmem>>, vector<1x32xf32>
    %cst = arith.constant dense<0.000000e+00> : vector<16xf32>
    %10 = vector.multi_reduction <add>, %7, %cst [1] : vector<16x32xf32> to vector<16xf32>
    %11 = vector.shape_cast %10 : vector<16xf32> to vector<16x1xf32>
    %cst_12 = arith.constant 3.200000e+01 : f32
    %12 = vector.broadcast %cst_12 : f32 to vector<16x1xf32>
    %13 = arith.divf %11, %12 : vector<16x1xf32>
    %14 = vector.broadcast %13 : vector<16x1xf32> to vector<16x32xf32>
    %15 = arith.subf %7, %14 : vector<16x32xf32>
    %16 = arith.mulf %15, %15 : vector<16x32xf32>
    %cst_13 = arith.constant dense<0.000000e+00> : vector<16xf32>
    %17 = vector.multi_reduction <add>, %16, %cst_13 [1] : vector<16x32xf32> to vector<16xf32>
    %18 = vector.shape_cast %17 : vector<16xf32> to vector<16x1xf32>
    %cst_14 = arith.constant 3.200000e+01 : f32
    %19 = vector.broadcast %cst_14 : f32 to vector<16x1xf32>
    %20 = arith.divf %18, %19 : vector<16x1xf32>
    %cst_15 = arith.constant 9.99999996E-13 : f32
    %21 = vector.broadcast %cst_15 : f32 to vector<16x1xf32>
    %22 = arith.addf %20, %21 : vector<16x1xf32>
    %23 = math.rsqrt %22 : vector<16x1xf32>
    %24 = vector.broadcast %23 : vector<16x1xf32> to vector<16x32xf32>
    %25 = arith.mulf %15, %24 : vector<16x32xf32>
    %26 = vector.broadcast %8 : vector<1x32xf32> to vector<16x32xf32>
    %27 = arith.mulf %25, %26 : vector<16x32xf32>
    %28 = vector.broadcast %9 : vector<1x32xf32> to vector<16x32xf32>
    %29 = arith.addf %27, %28 : vector<16x32xf32>
    %c0_16 = arith.constant 0 : index
    %c0_17 = arith.constant 0 : index
    %c0_18 = arith.constant 0 : index
    %30 = vector.load %arg3[%c0_16, %c0_17, %c0_18] : memref<2x1x8xf32, #tpu.memory_space<vmem>>, vector<2x1x8xf32>
    %31 = tpu.concatenate %30, %30, %30, %30 in 0 : vector<2x1x8xf32>, vector<2x1x8xf32>, vector<2x1x8xf32>, vector<2x1x8xf32> -> vector<8x1x8xf32>
    %32 = arith.truncf %29 : vector<16x32xf32> to vector<16x32xbf16>
    %c0_19 = arith.constant 0 : index
    %c0_20 = arith.constant 0 : index
    %c0_21 = arith.constant 0 : index
    %33 = vector.load %arg6[%c0_19, %c0_20, %c0_21] : memref<2x32x96xbf16, #tpu.memory_space<vmem>>, vector<1x32x96xbf16>
    %34 = vector.shape_cast %33 : vector<1x32x96xbf16> to vector<32x96xbf16>
    %cst_22 = arith.constant dense<0.000000e+00> : vector<16x96xf32>
    %35 = tpu.matmul %32, %34, %cst_22 {dimension_numbers = #tpu.dot_dimension_numbers<[1], [0], [0], [1], [0, 0, 1, 1], [], []>} : vector<16x32xbf16>, vector<32x96xbf16>, vector<16x96xf32> -> vector<16x96xf32>
    %c0_23 = arith.constant 0 : index
    %c0_24 = arith.constant 0 : index
    %c0_25 = arith.constant 0 : index
    %36 = vector.load %arg7[%c0_23, %c0_24, %c0_25] : memref<2x1x96xf32, #tpu.memory_space<vmem>>, vector<1x1x96xf32>
    %37 = vector.shape_cast %36 : vector<1x1x96xf32> to vector<1x96xf32>
    %38 = vector.broadcast %37 : vector<1x96xf32> to vector<16x96xf32>
    %39 = arith.addf %35, %38 : vector<16x96xf32>
    %40 = vector.extract_strided_slice %39 {offsets = [0, 0], sizes = [16, 32], strides = [1, 1]} : vector<16x96xf32> to vector<16x32xf32>
    %41 = vector.extract_strided_slice %40 {offsets = [0, 0], sizes = [16, 8], strides = [1, 1]} : vector<16x32xf32> to vector<16x8xf32>
    %42 = vector.shape_cast %41 : vector<16x8xf32> to vector<2x8x8xf32>
    %43 = vector.extract_strided_slice %40 {offsets = [0, 8], sizes = [16, 8], strides = [1, 1]} : vector<16x32xf32> to vector<16x8xf32>
    %44 = vector.shape_cast %43 : vector<16x8xf32> to vector<2x8x8xf32>
    %45 = vector.extract_strided_slice %40 {offsets = [0, 16], sizes = [16, 8], strides = [1, 1]} : vector<16x32xf32> to vector<16x8xf32>
    %46 = vector.shape_cast %45 : vector<16x8xf32> to vector<2x8x8xf32>
    %47 = vector.extract_strided_slice %40 {offsets = [0, 24], sizes = [16, 8], strides = [1, 1]} : vector<16x32xf32> to vector<16x8xf32>
    %48 = vector.shape_cast %47 : vector<16x8xf32> to vector<2x8x8xf32>
    %49 = tpu.concatenate %42, %44, %46, %48 in 0 : vector<2x8x8xf32>, vector<2x8x8xf32>, vector<2x8x8xf32>, vector<2x8x8xf32> -> vector<8x8x8xf32>
    %50 = arith.truncf %49 : vector<8x8x8xf32> to vector<8x8x8xbf16>
    %51 = vector.extract_strided_slice %39 {offsets = [0, 32], sizes = [16, 32], strides = [1, 1]} : vector<16x96xf32> to vector<16x32xf32>
    %52 = vector.extract_strided_slice %51 {offsets = [0, 0], sizes = [16, 8], strides = [1, 1]} : vector<16x32xf32> to vector<16x8xf32>
    %53 = vector.shape_cast %52 : vector<16x8xf32> to vector<2x8x8xf32>
    %54 = vector.extract_strided_slice %51 {offsets = [0, 8], sizes = [16, 8], strides = [1, 1]} : vector<16x32xf32> to vector<16x8xf32>
    %55 = vector.shape_cast %54 : vector<16x8xf32> to vector<2x8x8xf32>
    %56 = vector.extract_strided_slice %51 {offsets = [0, 16], sizes = [16, 8], strides = [1, 1]} : vector<16x32xf32> to vector<16x8xf32>
    %57 = vector.shape_cast %56 : vector<16x8xf32> to vector<2x8x8xf32>
    %58 = vector.extract_strided_slice %51 {offsets = [0, 24], sizes = [16, 8], strides = [1, 1]} : vector<16x32xf32> to vector<16x8xf32>
    %59 = vector.shape_cast %58 : vector<16x8xf32> to vector<2x8x8xf32>
    %60 = tpu.concatenate %53, %55, %57, %59 in 0 : vector<2x8x8xf32>, vector<2x8x8xf32>, vector<2x8x8xf32>, vector<2x8x8xf32> -> vector<8x8x8xf32>
    %61 = arith.truncf %60 : vector<8x8x8xf32> to vector<8x8x8xbf16>
    %62 = vector.extract_strided_slice %39 {offsets = [0, 64], sizes = [16, 32], strides = [1, 1]} : vector<16x96xf32> to vector<16x32xf32>
    %63 = vector.extract_strided_slice %62 {offsets = [0, 0], sizes = [16, 8], strides = [1, 1]} : vector<16x32xf32> to vector<16x8xf32>
    %64 = vector.shape_cast %63 : vector<16x8xf32> to vector<2x8x8xf32>
    %65 = vector.extract_strided_slice %62 {offsets = [0, 8], sizes = [16, 8], strides = [1, 1]} : vector<16x32xf32> to vector<16x8xf32>
    %66 = vector.shape_cast %65 : vector<16x8xf32> to vector<2x8x8xf32>
    %67 = vector.extract_strided_slice %62 {offsets = [0, 16], sizes = [16, 8], strides = [1, 1]} : vector<16x32xf32> to vector<16x8xf32>
    %68 = vector.shape_cast %67 : vector<16x8xf32> to vector<2x8x8xf32>
    %69 = vector.extract_strided_slice %62 {offsets = [0, 24], sizes = [16, 8], strides = [1, 1]} : vector<16x32xf32> to vector<16x8xf32>
    %70 = vector.shape_cast %69 : vector<16x8xf32> to vector<2x8x8xf32>
    %71 = tpu.concatenate %64, %66, %68, %70 in 0 : vector<2x8x8xf32>, vector<2x8x8xf32>, vector<2x8x8xf32>, vector<2x8x8xf32> -> vector<8x8x8xf32>
    %72 = arith.truncf %71 : vector<8x8x8xf32> to vector<8x8x8xbf16>
    "tpu.trace_start"() <{level = 10 : i32, message = "nqd,nkd->nqk"}> : () -> ()
    %cst_26 = arith.constant dense<0.000000e+00> : vector<8x8x8xf32>
    %73 = tpu.matmul %50, %61, %cst_26 {dimension_numbers = #tpu.dot_dimension_numbers<[2], [2], [1], [1], [0, 0, 0, 1, 1, 1], [0], [0]>} : vector<8x8x8xbf16>, vector<8x8x8xbf16>, vector<8x8x8xf32> -> vector<8x8x8xf32>
    "tpu.trace_stop"() : () -> ()
    %cst_27 = arith.constant 0.353553385 : f32
    %74 = vector.broadcast %cst_27 : f32 to vector<8x8x8xf32>
    %75 = arith.mulf %73, %74 : vector<8x8x8xf32>
    %76 = vector.broadcast %31 : vector<8x1x8xf32> to vector<8x8x8xf32>
    %77 = arith.addf %75, %76 : vector<8x8x8xf32>
    %cst_28 = arith.constant dense<0xFF800000> : vector<8x8xf32>
    %78 = vector.multi_reduction <maximumf>, %77, %cst_28 [2] : vector<8x8x8xf32> to vector<8x8xf32>
    %79 = vector.shape_cast %78 : vector<8x8xf32> to vector<8x8x1xf32>
    %80 = vector.broadcast %79 : vector<8x8x1xf32> to vector<8x8x8xf32>
    %81 = arith.subf %77, %80 : vector<8x8x8xf32>
    %82 = math.exp %81 : vector<8x8x8xf32>
    %cst_29 = arith.constant dense<0.000000e+00> : vector<8x8xf32>
    %83 = vector.multi_reduction <add>, %82, %cst_29 [2] : vector<8x8x8xf32> to vector<8x8xf32>
    %84 = vector.shape_cast %83 : vector<8x8xf32> to vector<8x8x1xf32>
    %85 = tpu.reciprocal %84 {approx = true} : vector<8x8x1xf32> -> vector<8x8x1xf32>
    %86 = vector.broadcast %85 : vector<8x8x1xf32> to vector<8x8x8xf32>
    %87 = arith.mulf %82, %86 : vector<8x8x8xf32>
    %88 = arith.truncf %87 : vector<8x8x8xf32> to vector<8x8x8xbf16>
    "tpu.trace_start"() <{level = 10 : i32, message = "nqk,nkd->nqd"}> : () -> ()
    %cst_30 = arith.constant dense<0.000000e+00> : vector<8x8x8xf32>
    %89 = tpu.matmul %88, %72, %cst_30 {dimension_numbers = #tpu.dot_dimension_numbers<[2], [1], [1], [2], [0, 0, 0, 1, 1, 2], [0], [0]>} : vector<8x8x8xbf16>, vector<8x8x8xbf16>, vector<8x8x8xf32> -> vector<8x8x8xf32>
    "tpu.trace_stop"() : () -> ()
    %90 = vector.extract_strided_slice %89 {offsets = [0, 0, 0], sizes = [2, 8, 8], strides = [1, 1, 1]} : vector<8x8x8xf32> to vector<2x8x8xf32>
    %91 = vector.shape_cast %90 : vector<2x8x8xf32> to vector<16x8xf32>
    %92 = vector.extract_strided_slice %89 {offsets = [2, 0, 0], sizes = [2, 8, 8], strides = [1, 1, 1]} : vector<8x8x8xf32> to vector<2x8x8xf32>
    %93 = vector.shape_cast %92 : vector<2x8x8xf32> to vector<16x8xf32>
    %94 = vector.extract_strided_slice %89 {offsets = [4, 0, 0], sizes = [2, 8, 8], strides = [1, 1, 1]} : vector<8x8x8xf32> to vector<2x8x8xf32>
    %95 = vector.shape_cast %94 : vector<2x8x8xf32> to vector<16x8xf32>
    %96 = vector.extract_strided_slice %89 {offsets = [6, 0, 0], sizes = [2, 8, 8], strides = [1, 1, 1]} : vector<8x8x8xf32> to vector<2x8x8xf32>
    %97 = vector.shape_cast %96 : vector<2x8x8xf32> to vector<16x8xf32>
    %98 = tpu.concatenate %91, %93, %95, %97 in 1 : vector<16x8xf32>, vector<16x8xf32>, vector<16x8xf32>, vector<16x8xf32> -> vector<16x32xf32>
    %99 = arith.truncf %98 : vector<16x32xf32> to vector<16x32xbf16>
    %c0_31 = arith.constant 0 : index
    %c0_32 = arith.constant 0 : index
    %c0_33 = arith.constant 0 : index
    %100 = vector.load %arg8[%c0_31, %c0_32, %c0_33] : memref<2x32x32xbf16, #tpu.memory_space<vmem>>, vector<1x32x32xbf16>
    %101 = vector.shape_cast %100 : vector<1x32x32xbf16> to vector<32x32xbf16>
    %cst_34 = arith.constant dense<0.000000e+00> : vector<16x32xf32>
    %102 = tpu.matmul %99, %101, %cst_34 {dimension_numbers = #tpu.dot_dimension_numbers<[1], [0], [0], [1], [0, 0, 1, 1], [], []>} : vector<16x32xbf16>, vector<32x32xbf16>, vector<16x32xf32> -> vector<16x32xf32>
    %c0_35 = arith.constant 0 : index
    %c0_36 = arith.constant 0 : index
    %c0_37 = arith.constant 0 : index
    %103 = vector.load %arg9[%c0_35, %c0_36, %c0_37] : memref<2x1x32xf32, #tpu.memory_space<vmem>>, vector<1x1x32xf32>
    %104 = vector.shape_cast %103 : vector<1x1x32xf32> to vector<1x32xf32>
    %105 = vector.broadcast %104 : vector<1x32xf32> to vector<16x32xf32>
    %106 = arith.addf %102, %105 : vector<16x32xf32>
    %107 = arith.addf %29, %106 : vector<16x32xf32>
    %c0_38 = arith.constant 0 : index
    %c0_39 = arith.constant 0 : index
    %c0_40 = arith.constant 0 : index
    %108 = vector.load %arg10[%c0_38, %c0_39, %c0_40] : memref<2x1x32xf32, #tpu.memory_space<vmem>>, vector<1x1x32xf32>
    %109 = vector.shape_cast %108 : vector<1x1x32xf32> to vector<1x32xf32>
    %c0_41 = arith.constant 0 : index
    %c0_42 = arith.constant 0 : index
    %c0_43 = arith.constant 0 : index
    %110 = vector.load %arg11[%c0_41, %c0_42, %c0_43] : memref<2x1x32xf32, #tpu.memory_space<vmem>>, vector<1x1x32xf32>
    %111 = vector.shape_cast %110 : vector<1x1x32xf32> to vector<1x32xf32>
    %cst_44 = arith.constant dense<0.000000e+00> : vector<16xf32>
    %112 = vector.multi_reduction <add>, %107, %cst_44 [1] : vector<16x32xf32> to vector<16xf32>
    %113 = vector.shape_cast %112 : vector<16xf32> to vector<16x1xf32>
    %cst_45 = arith.constant 3.200000e+01 : f32
    %114 = vector.broadcast %cst_45 : f32 to vector<16x1xf32>
    %115 = arith.divf %113, %114 : vector<16x1xf32>
    %116 = vector.broadcast %115 : vector<16x1xf32> to vector<16x32xf32>
    %117 = arith.subf %107, %116 : vector<16x32xf32>
    %118 = arith.mulf %117, %117 : vector<16x32xf32>
    %cst_46 = arith.constant dense<0.000000e+00> : vector<16xf32>
    %119 = vector.multi_reduction <add>, %118, %cst_46 [1] : vector<16x32xf32> to vector<16xf32>
    %120 = vector.shape_cast %119 : vector<16xf32> to vector<16x1xf32>
    %cst_47 = arith.constant 3.200000e+01 : f32
    %121 = vector.broadcast %cst_47 : f32 to vector<16x1xf32>
    %122 = arith.divf %120, %121 : vector<16x1xf32>
    %cst_48 = arith.constant 9.99999996E-13 : f32
    %123 = vector.broadcast %cst_48 : f32 to vector<16x1xf32>
    %124 = arith.addf %122, %123 : vector<16x1xf32>
    %125 = math.rsqrt %124 : vector<16x1xf32>
    %126 = vector.broadcast %125 : vector<16x1xf32> to vector<16x32xf32>
    %127 = arith.mulf %117, %126 : vector<16x32xf32>
    %128 = vector.broadcast %109 : vector<1x32xf32> to vector<16x32xf32>
    %129 = arith.mulf %127, %128 : vector<16x32xf32>
    %130 = vector.broadcast %111 : vector<1x32xf32> to vector<16x32xf32>
    %131 = arith.addf %129, %130 : vector<16x32xf32>
    %132 = arith.truncf %131 : vector<16x32xf32> to vector<16x32xbf16>
    %c0_49 = arith.constant 0 : index
    %c0_50 = arith.constant 0 : index
    %c0_51 = arith.constant 0 : index
    %133 = vector.load %arg12[%c0_49, %c0_50, %c0_51] : memref<2x32x64xbf16, #tpu.memory_space<vmem>>, vector<1x32x64xbf16>
    %134 = vector.shape_cast %133 : vector<1x32x64xbf16> to vector<32x64xbf16>
    %cst_52 = arith.constant dense<0.000000e+00> : vector<16x64xf32>
    %135 = tpu.matmul %132, %134, %cst_52 {dimension_numbers = #tpu.dot_dimension_numbers<[1], [0], [0], [1], [0, 0, 1, 1], [], []>} : vector<16x32xbf16>, vector<32x64xbf16>, vector<16x64xf32> -> vector<16x64xf32>
    %c0_53 = arith.constant 0 : index
    %c0_54 = arith.constant 0 : index
    %c0_55 = arith.constant 0 : index
    %136 = vector.load %arg13[%c0_53, %c0_54, %c0_55] : memref<2x1x64xf32, #tpu.memory_space<vmem>>, vector<1x1x64xf32>
    %137 = vector.shape_cast %136 : vector<1x1x64xf32> to vector<1x64xf32>
    %138 = vector.broadcast %137 : vector<1x64xf32> to vector<16x64xf32>
    %139 = arith.addf %135, %138 : vector<16x64xf32>
    %cst_56 = arith.constant 5.000000e-01 : f32
    %140 = vector.broadcast %cst_56 : f32 to vector<16x64xf32>
    %141 = arith.mulf %140, %139 : vector<16x64xf32>
    %cst_57 = arith.constant 4.471500e-02 : f32
    %142 = vector.broadcast %cst_57 : f32 to vector<16x64xf32>
    %143 = arith.mulf %142, %139 : vector<16x64xf32>
    %144 = arith.mulf %143, %139 : vector<16x64xf32>
    %145 = arith.mulf %144, %139 : vector<16x64xf32>
    %146 = arith.addf %139, %145 : vector<16x64xf32>
    %cst_58 = arith.constant 0.797884583 : f32
    %147 = vector.broadcast %cst_58 : f32 to vector<16x64xf32>
    %148 = arith.mulf %147, %146 : vector<16x64xf32>
    %149 = math.tanh %148 : vector<16x64xf32>
    %cst_59 = arith.constant 1.000000e+00 : f32
    %150 = vector.broadcast %cst_59 : f32 to vector<16x64xf32>
    %151 = arith.addf %150, %149 : vector<16x64xf32>
    %152 = arith.mulf %141, %151 : vector<16x64xf32>
    %153 = arith.truncf %152 : vector<16x64xf32> to vector<16x64xbf16>
    %c0_60 = arith.constant 0 : index
    %c0_61 = arith.constant 0 : index
    %c0_62 = arith.constant 0 : index
    %154 = vector.load %arg14[%c0_60, %c0_61, %c0_62] : memref<2x64x32xbf16, #tpu.memory_space<vmem>>, vector<1x64x32xbf16>
    %155 = vector.shape_cast %154 : vector<1x64x32xbf16> to vector<64x32xbf16>
    %cst_63 = arith.constant dense<0.000000e+00> : vector<16x32xf32>
    %156 = tpu.matmul %153, %155, %cst_63 {dimension_numbers = #tpu.dot_dimension_numbers<[1], [0], [0], [1], [0, 0, 1, 1], [], []>} : vector<16x64xbf16>, vector<64x32xbf16>, vector<16x32xf32> -> vector<16x32xf32>
    %c0_64 = arith.constant 0 : index
    %c0_65 = arith.constant 0 : index
    %c0_66 = arith.constant 0 : index
    %157 = vector.load %arg15[%c0_64, %c0_65, %c0_66] : memref<2x1x32xf32, #tpu.memory_space<vmem>>, vector<1x1x32xf32>
    %158 = vector.shape_cast %157 : vector<1x1x32xf32> to vector<1x32xf32>
    %159 = vector.broadcast %158 : vector<1x32xf32> to vector<16x32xf32>
    %160 = arith.addf %156, %159 : vector<16x32xf32>
    %161 = arith.addf %131, %160 : vector<16x32xf32>
    %c0_67 = arith.constant 0 : index
    %c0_68 = arith.constant 0 : index
    %c0_69 = arith.constant 0 : index
    %162 = vector.load %arg16[%c0_67, %c0_68, %c0_69] : memref<2x1x32xf32, #tpu.memory_space<vmem>>, vector<1x1x32xf32>
    %163 = vector.shape_cast %162 : vector<1x1x32xf32> to vector<1x32xf32>
    %c0_70 = arith.constant 0 : index
    %c0_71 = arith.constant 0 : index
    %c0_72 = arith.constant 0 : index
    %164 = vector.load %arg17[%c0_70, %c0_71, %c0_72] : memref<2x1x32xf32, #tpu.memory_space<vmem>>, vector<1x1x32xf32>
    %165 = vector.shape_cast %164 : vector<1x1x32xf32> to vector<1x32xf32>
    %cst_73 = arith.constant dense<0.000000e+00> : vector<16xf32>
    %166 = vector.multi_reduction <add>, %161, %cst_73 [1] : vector<16x32xf32> to vector<16xf32>
    %167 = vector.shape_cast %166 : vector<16xf32> to vector<16x1xf32>
    %cst_74 = arith.constant 3.200000e+01 : f32
    %168 = vector.broadcast %cst_74 : f32 to vector<16x1xf32>
    %169 = arith.divf %167, %168 : vector<16x1xf32>
    %170 = vector.broadcast %169 : vector<16x1xf32> to vector<16x32xf32>
    %171 = arith.subf %161, %170 : vector<16x32xf32>
    %172 = arith.mulf %171, %171 : vector<16x32xf32>
    %cst_75 = arith.constant dense<0.000000e+00> : vector<16xf32>
    %173 = vector.multi_reduction <add>, %172, %cst_75 [1] : vector<16x32xf32> to vector<16xf32>
    %174 = vector.shape_cast %173 : vector<16xf32> to vector<16x1xf32>
    %cst_76 = arith.constant 3.200000e+01 : f32
    %175 = vector.broadcast %cst_76 : f32 to vector<16x1xf32>
    %176 = arith.divf %174, %175 : vector<16x1xf32>
    %cst_77 = arith.constant 9.99999996E-13 : f32
    %177 = vector.broadcast %cst_77 : f32 to vector<16x1xf32>
    %178 = arith.addf %176, %177 : vector<16x1xf32>
    %179 = math.rsqrt %178 : vector<16x1xf32>
    %180 = vector.broadcast %179 : vector<16x1xf32> to vector<16x32xf32>
    %181 = arith.mulf %171, %180 : vector<16x32xf32>
    %182 = vector.broadcast %163 : vector<1x32xf32> to vector<16x32xf32>
    %183 = arith.mulf %181, %182 : vector<16x32xf32>
    %184 = vector.broadcast %165 : vector<1x32xf32> to vector<16x32xf32>
    %185 = arith.addf %183, %184 : vector<16x32xf32>
    %186 = arith.truncf %185 : vector<16x32xf32> to vector<16x32xbf16>
    %c1 = arith.constant 1 : index
    %c0_78 = arith.constant 0 : index
    %c0_79 = arith.constant 0 : index
    %187 = vector.load %arg6[%c1, %c0_78, %c0_79] : memref<2x32x96xbf16, #tpu.memory_space<vmem>>, vector<1x32x96xbf16>
    %188 = vector.shape_cast %187 : vector<1x32x96xbf16> to vector<32x96xbf16>
    %cst_80 = arith.constant dense<0.000000e+00> : vector<16x96xf32>
    %189 = tpu.matmul %186, %188, %cst_80 {dimension_numbers = #tpu.dot_dimension_numbers<[1], [0], [0], [1], [0, 0, 1, 1], [], []>} : vector<16x32xbf16>, vector<32x96xbf16>, vector<16x96xf32> -> vector<16x96xf32>
    %c1_81 = arith.constant 1 : index
    %c0_82 = arith.constant 0 : index
    %c0_83 = arith.constant 0 : index
    %190 = vector.load %arg7[%c1_81, %c0_82, %c0_83] : memref<2x1x96xf32, #tpu.memory_space<vmem>>, vector<1x1x96xf32>
    %191 = vector.shape_cast %190 : vector<1x1x96xf32> to vector<1x96xf32>
    %192 = vector.broadcast %191 : vector<1x96xf32> to vector<16x96xf32>
    %193 = arith.addf %189, %192 : vector<16x96xf32>
    %194 = vector.extract_strided_slice %193 {offsets = [0, 0], sizes = [16, 32], strides = [1, 1]} : vector<16x96xf32> to vector<16x32xf32>
    %195 = vector.extract_strided_slice %194 {offsets = [0, 0], sizes = [16, 8], strides = [1, 1]} : vector<16x32xf32> to vector<16x8xf32>
    %196 = vector.shape_cast %195 : vector<16x8xf32> to vector<2x8x8xf32>
    %197 = vector.extract_strided_slice %194 {offsets = [0, 8], sizes = [16, 8], strides = [1, 1]} : vector<16x32xf32> to vector<16x8xf32>
    %198 = vector.shape_cast %197 : vector<16x8xf32> to vector<2x8x8xf32>
    %199 = vector.extract_strided_slice %194 {offsets = [0, 16], sizes = [16, 8], strides = [1, 1]} : vector<16x32xf32> to vector<16x8xf32>
    %200 = vector.shape_cast %199 : vector<16x8xf32> to vector<2x8x8xf32>
    %201 = vector.extract_strided_slice %194 {offsets = [0, 24], sizes = [16, 8], strides = [1, 1]} : vector<16x32xf32> to vector<16x8xf32>
    %202 = vector.shape_cast %201 : vector<16x8xf32> to vector<2x8x8xf32>
    %203 = tpu.concatenate %196, %198, %200, %202 in 0 : vector<2x8x8xf32>, vector<2x8x8xf32>, vector<2x8x8xf32>, vector<2x8x8xf32> -> vector<8x8x8xf32>
    %204 = arith.truncf %203 : vector<8x8x8xf32> to vector<8x8x8xbf16>
    %205 = vector.extract_strided_slice %193 {offsets = [0, 32], sizes = [16, 32], strides = [1, 1]} : vector<16x96xf32> to vector<16x32xf32>
    %206 = vector.extract_strided_slice %205 {offsets = [0, 0], sizes = [16, 8], strides = [1, 1]} : vector<16x32xf32> to vector<16x8xf32>
    %207 = vector.shape_cast %206 : vector<16x8xf32> to vector<2x8x8xf32>
    %208 = vector.extract_strided_slice %205 {offsets = [0, 8], sizes = [16, 8], strides = [1, 1]} : vector<16x32xf32> to vector<16x8xf32>
    %209 = vector.shape_cast %208 : vector<16x8xf32> to vector<2x8x8xf32>
    %210 = vector.extract_strided_slice %205 {offsets = [0, 16], sizes = [16, 8], strides = [1, 1]} : vector<16x32xf32> to vector<16x8xf32>
    %211 = vector.shape_cast %210 : vector<16x8xf32> to vector<2x8x8xf32>
    %212 = vector.extract_strided_slice %205 {offsets = [0, 24], sizes = [16, 8], strides = [1, 1]} : vector<16x32xf32> to vector<16x8xf32>
    %213 = vector.shape_cast %212 : vector<16x8xf32> to vector<2x8x8xf32>
    %214 = tpu.concatenate %207, %209, %211, %213 in 0 : vector<2x8x8xf32>, vector<2x8x8xf32>, vector<2x8x8xf32>, vector<2x8x8xf32> -> vector<8x8x8xf32>
    %215 = arith.truncf %214 : vector<8x8x8xf32> to vector<8x8x8xbf16>
    %216 = vector.extract_strided_slice %193 {offsets = [0, 64], sizes = [16, 32], strides = [1, 1]} : vector<16x96xf32> to vector<16x32xf32>
    %217 = vector.extract_strided_slice %216 {offsets = [0, 0], sizes = [16, 8], strides = [1, 1]} : vector<16x32xf32> to vector<16x8xf32>
    %218 = vector.shape_cast %217 : vector<16x8xf32> to vector<2x8x8xf32>
    %219 = vector.extract_strided_slice %216 {offsets = [0, 8], sizes = [16, 8], strides = [1, 1]} : vector<16x32xf32> to vector<16x8xf32>
    %220 = vector.shape_cast %219 : vector<16x8xf32> to vector<2x8x8xf32>
    %221 = vector.extract_strided_slice %216 {offsets = [0, 16], sizes = [16, 8], strides = [1, 1]} : vector<16x32xf32> to vector<16x8xf32>
    %222 = vector.shape_cast %221 : vector<16x8xf32> to vector<2x8x8xf32>
    %223 = vector.extract_strided_slice %216 {offsets = [0, 24], sizes = [16, 8], strides = [1, 1]} : vector<16x32xf32> to vector<16x8xf32>
    %224 = vector.shape_cast %223 : vector<16x8xf32> to vector<2x8x8xf32>
    %225 = tpu.concatenate %218, %220, %222, %224 in 0 : vector<2x8x8xf32>, vector<2x8x8xf32>, vector<2x8x8xf32>, vector<2x8x8xf32> -> vector<8x8x8xf32>
    %226 = arith.truncf %225 : vector<8x8x8xf32> to vector<8x8x8xbf16>
    "tpu.trace_start"() <{level = 10 : i32, message = "nqd,nkd->nqk"}> : () -> ()
    %cst_84 = arith.constant dense<0.000000e+00> : vector<8x8x8xf32>
    %227 = tpu.matmul %204, %215, %cst_84 {dimension_numbers = #tpu.dot_dimension_numbers<[2], [2], [1], [1], [0, 0, 0, 1, 1, 1], [0], [0]>} : vector<8x8x8xbf16>, vector<8x8x8xbf16>, vector<8x8x8xf32> -> vector<8x8x8xf32>
    "tpu.trace_stop"() : () -> ()
    %cst_85 = arith.constant 0.353553385 : f32
    %228 = vector.broadcast %cst_85 : f32 to vector<8x8x8xf32>
    %229 = arith.mulf %227, %228 : vector<8x8x8xf32>
    %230 = vector.broadcast %31 : vector<8x1x8xf32> to vector<8x8x8xf32>
    %231 = arith.addf %229, %230 : vector<8x8x8xf32>
    %cst_86 = arith.constant dense<0xFF800000> : vector<8x8xf32>
    %232 = vector.multi_reduction <maximumf>, %231, %cst_86 [2] : vector<8x8x8xf32> to vector<8x8xf32>
    %233 = vector.shape_cast %232 : vector<8x8xf32> to vector<8x8x1xf32>
    %234 = vector.broadcast %233 : vector<8x8x1xf32> to vector<8x8x8xf32>
    %235 = arith.subf %231, %234 : vector<8x8x8xf32>
    %236 = math.exp %235 : vector<8x8x8xf32>
    %cst_87 = arith.constant dense<0.000000e+00> : vector<8x8xf32>
    %237 = vector.multi_reduction <add>, %236, %cst_87 [2] : vector<8x8x8xf32> to vector<8x8xf32>
    %238 = vector.shape_cast %237 : vector<8x8xf32> to vector<8x8x1xf32>
    %239 = tpu.reciprocal %238 {approx = true} : vector<8x8x1xf32> -> vector<8x8x1xf32>
    %240 = vector.broadcast %239 : vector<8x8x1xf32> to vector<8x8x8xf32>
    %241 = arith.mulf %236, %240 : vector<8x8x8xf32>
    %242 = arith.truncf %241 : vector<8x8x8xf32> to vector<8x8x8xbf16>
    "tpu.trace_start"() <{level = 10 : i32, message = "nqk,nkd->nqd"}> : () -> ()
    %cst_88 = arith.constant dense<0.000000e+00> : vector<8x8x8xf32>
    %243 = tpu.matmul %242, %226, %cst_88 {dimension_numbers = #tpu.dot_dimension_numbers<[2], [1], [1], [2], [0, 0, 0, 1, 1, 2], [0], [0]>} : vector<8x8x8xbf16>, vector<8x8x8xbf16>, vector<8x8x8xf32> -> vector<8x8x8xf32>
    "tpu.trace_stop"() : () -> ()
    %244 = vector.extract_strided_slice %243 {offsets = [0, 0, 0], sizes = [2, 8, 8], strides = [1, 1, 1]} : vector<8x8x8xf32> to vector<2x8x8xf32>
    %245 = vector.shape_cast %244 : vector<2x8x8xf32> to vector<16x8xf32>
    %246 = vector.extract_strided_slice %243 {offsets = [2, 0, 0], sizes = [2, 8, 8], strides = [1, 1, 1]} : vector<8x8x8xf32> to vector<2x8x8xf32>
    %247 = vector.shape_cast %246 : vector<2x8x8xf32> to vector<16x8xf32>
    %248 = vector.extract_strided_slice %243 {offsets = [4, 0, 0], sizes = [2, 8, 8], strides = [1, 1, 1]} : vector<8x8x8xf32> to vector<2x8x8xf32>
    %249 = vector.shape_cast %248 : vector<2x8x8xf32> to vector<16x8xf32>
    %250 = vector.extract_strided_slice %243 {offsets = [6, 0, 0], sizes = [2, 8, 8], strides = [1, 1, 1]} : vector<8x8x8xf32> to vector<2x8x8xf32>
    %251 = vector.shape_cast %250 : vector<2x8x8xf32> to vector<16x8xf32>
    %252 = tpu.concatenate %245, %247, %249, %251 in 1 : vector<16x8xf32>, vector<16x8xf32>, vector<16x8xf32>, vector<16x8xf32> -> vector<16x32xf32>
    %253 = arith.truncf %252 : vector<16x32xf32> to vector<16x32xbf16>
    %c1_89 = arith.constant 1 : index
    %c0_90 = arith.constant 0 : index
    %c0_91 = arith.constant 0 : index
    %254 = vector.load %arg8[%c1_89, %c0_90, %c0_91] : memref<2x32x32xbf16, #tpu.memory_space<vmem>>, vector<1x32x32xbf16>
    %255 = vector.shape_cast %254 : vector<1x32x32xbf16> to vector<32x32xbf16>
    %cst_92 = arith.constant dense<0.000000e+00> : vector<16x32xf32>
    %256 = tpu.matmul %253, %255, %cst_92 {dimension_numbers = #tpu.dot_dimension_numbers<[1], [0], [0], [1], [0, 0, 1, 1], [], []>} : vector<16x32xbf16>, vector<32x32xbf16>, vector<16x32xf32> -> vector<16x32xf32>
    %c1_93 = arith.constant 1 : index
    %c0_94 = arith.constant 0 : index
    %c0_95 = arith.constant 0 : index
    %257 = vector.load %arg9[%c1_93, %c0_94, %c0_95] : memref<2x1x32xf32, #tpu.memory_space<vmem>>, vector<1x1x32xf32>
    %258 = vector.shape_cast %257 : vector<1x1x32xf32> to vector<1x32xf32>
    %259 = vector.broadcast %258 : vector<1x32xf32> to vector<16x32xf32>
    %260 = arith.addf %256, %259 : vector<16x32xf32>
    %261 = arith.addf %185, %260 : vector<16x32xf32>
    %c1_96 = arith.constant 1 : index
    %c0_97 = arith.constant 0 : index
    %c0_98 = arith.constant 0 : index
    %262 = vector.load %arg10[%c1_96, %c0_97, %c0_98] : memref<2x1x32xf32, #tpu.memory_space<vmem>>, vector<1x1x32xf32>
    %263 = vector.shape_cast %262 : vector<1x1x32xf32> to vector<1x32xf32>
    %c1_99 = arith.constant 1 : index
    %c0_100 = arith.constant 0 : index
    %c0_101 = arith.constant 0 : index
    %264 = vector.load %arg11[%c1_99, %c0_100, %c0_101] : memref<2x1x32xf32, #tpu.memory_space<vmem>>, vector<1x1x32xf32>
    %265 = vector.shape_cast %264 : vector<1x1x32xf32> to vector<1x32xf32>
    %cst_102 = arith.constant dense<0.000000e+00> : vector<16xf32>
    %266 = vector.multi_reduction <add>, %261, %cst_102 [1] : vector<16x32xf32> to vector<16xf32>
    %267 = vector.shape_cast %266 : vector<16xf32> to vector<16x1xf32>
    %cst_103 = arith.constant 3.200000e+01 : f32
    %268 = vector.broadcast %cst_103 : f32 to vector<16x1xf32>
    %269 = arith.divf %267, %268 : vector<16x1xf32>
    %270 = vector.broadcast %269 : vector<16x1xf32> to vector<16x32xf32>
    %271 = arith.subf %261, %270 : vector<16x32xf32>
    %272 = arith.mulf %271, %271 : vector<16x32xf32>
    %cst_104 = arith.constant dense<0.000000e+00> : vector<16xf32>
    %273 = vector.multi_reduction <add>, %272, %cst_104 [1] : vector<16x32xf32> to vector<16xf32>
    %274 = vector.shape_cast %273 : vector<16xf32> to vector<16x1xf32>
    %cst_105 = arith.constant 3.200000e+01 : f32
    %275 = vector.broadcast %cst_105 : f32 to vector<16x1xf32>
    %276 = arith.divf %274, %275 : vector<16x1xf32>
    %cst_106 = arith.constant 9.99999996E-13 : f32
    %277 = vector.broadcast %cst_106 : f32 to vector<16x1xf32>
    %278 = arith.addf %276, %277 : vector<16x1xf32>
    %279 = math.rsqrt %278 : vector<16x1xf32>
    %280 = vector.broadcast %279 : vector<16x1xf32> to vector<16x32xf32>
    %281 = arith.mulf %271, %280 : vector<16x32xf32>
    %282 = vector.broadcast %263 : vector<1x32xf32> to vector<16x32xf32>
    %283 = arith.mulf %281, %282 : vector<16x32xf32>
    %284 = vector.broadcast %265 : vector<1x32xf32> to vector<16x32xf32>
    %285 = arith.addf %283, %284 : vector<16x32xf32>
    %286 = arith.truncf %285 : vector<16x32xf32> to vector<16x32xbf16>
    %c1_107 = arith.constant 1 : index
    %c0_108 = arith.constant 0 : index
    %c0_109 = arith.constant 0 : index
    %287 = vector.load %arg12[%c1_107, %c0_108, %c0_109] : memref<2x32x64xbf16, #tpu.memory_space<vmem>>, vector<1x32x64xbf16>
    %288 = vector.shape_cast %287 : vector<1x32x64xbf16> to vector<32x64xbf16>
    %cst_110 = arith.constant dense<0.000000e+00> : vector<16x64xf32>
    %289 = tpu.matmul %286, %288, %cst_110 {dimension_numbers = #tpu.dot_dimension_numbers<[1], [0], [0], [1], [0, 0, 1, 1], [], []>} : vector<16x32xbf16>, vector<32x64xbf16>, vector<16x64xf32> -> vector<16x64xf32>
    %c1_111 = arith.constant 1 : index
    %c0_112 = arith.constant 0 : index
    %c0_113 = arith.constant 0 : index
    %290 = vector.load %arg13[%c1_111, %c0_112, %c0_113] : memref<2x1x64xf32, #tpu.memory_space<vmem>>, vector<1x1x64xf32>
    %291 = vector.shape_cast %290 : vector<1x1x64xf32> to vector<1x64xf32>
    %292 = vector.broadcast %291 : vector<1x64xf32> to vector<16x64xf32>
    %293 = arith.addf %289, %292 : vector<16x64xf32>
    %cst_114 = arith.constant 5.000000e-01 : f32
    %294 = vector.broadcast %cst_114 : f32 to vector<16x64xf32>
    %295 = arith.mulf %294, %293 : vector<16x64xf32>
    %cst_115 = arith.constant 4.471500e-02 : f32
    %296 = vector.broadcast %cst_115 : f32 to vector<16x64xf32>
    %297 = arith.mulf %296, %293 : vector<16x64xf32>
    %298 = arith.mulf %297, %293 : vector<16x64xf32>
    %299 = arith.mulf %298, %293 : vector<16x64xf32>
    %300 = arith.addf %293, %299 : vector<16x64xf32>
    %cst_116 = arith.constant 0.797884583 : f32
    %301 = vector.broadcast %cst_116 : f32 to vector<16x64xf32>
    %302 = arith.mulf %301, %300 : vector<16x64xf32>
    %303 = math.tanh %302 : vector<16x64xf32>
    %cst_117 = arith.constant 1.000000e+00 : f32
    %304 = vector.broadcast %cst_117 : f32 to vector<16x64xf32>
    %305 = arith.addf %304, %303 : vector<16x64xf32>
    %306 = arith.mulf %295, %305 : vector<16x64xf32>
    %307 = arith.truncf %306 : vector<16x64xf32> to vector<16x64xbf16>
    %c1_118 = arith.constant 1 : index
    %c0_119 = arith.constant 0 : index
    %c0_120 = arith.constant 0 : index
    %308 = vector.load %arg14[%c1_118, %c0_119, %c0_120] : memref<2x64x32xbf16, #tpu.memory_space<vmem>>, vector<1x64x32xbf16>
    %309 = vector.shape_cast %308 : vector<1x64x32xbf16> to vector<64x32xbf16>
    %cst_121 = arith.constant dense<0.000000e+00> : vector<16x32xf32>
    %310 = tpu.matmul %307, %309, %cst_121 {dimension_numbers = #tpu.dot_dimension_numbers<[1], [0], [0], [1], [0, 0, 1, 1], [], []>} : vector<16x64xbf16>, vector<64x32xbf16>, vector<16x32xf32> -> vector<16x32xf32>
    %c1_122 = arith.constant 1 : index
    %c0_123 = arith.constant 0 : index
    %c0_124 = arith.constant 0 : index
    %311 = vector.load %arg15[%c1_122, %c0_123, %c0_124] : memref<2x1x32xf32, #tpu.memory_space<vmem>>, vector<1x1x32xf32>
    %312 = vector.shape_cast %311 : vector<1x1x32xf32> to vector<1x32xf32>
    %313 = vector.broadcast %312 : vector<1x32xf32> to vector<16x32xf32>
    %314 = arith.addf %310, %313 : vector<16x32xf32>
    %315 = arith.addf %285, %314 : vector<16x32xf32>
    %c1_125 = arith.constant 1 : index
    %c0_126 = arith.constant 0 : index
    %c0_127 = arith.constant 0 : index
    %316 = vector.load %arg16[%c1_125, %c0_126, %c0_127] : memref<2x1x32xf32, #tpu.memory_space<vmem>>, vector<1x1x32xf32>
    %317 = vector.shape_cast %316 : vector<1x1x32xf32> to vector<1x32xf32>
    %c1_128 = arith.constant 1 : index
    %c0_129 = arith.constant 0 : index
    %c0_130 = arith.constant 0 : index
    %318 = vector.load %arg17[%c1_128, %c0_129, %c0_130] : memref<2x1x32xf32, #tpu.memory_space<vmem>>, vector<1x1x32xf32>
    %319 = vector.shape_cast %318 : vector<1x1x32xf32> to vector<1x32xf32>
    %cst_131 = arith.constant dense<0.000000e+00> : vector<16xf32>
    %320 = vector.multi_reduction <add>, %315, %cst_131 [1] : vector<16x32xf32> to vector<16xf32>
    %321 = vector.shape_cast %320 : vector<16xf32> to vector<16x1xf32>
    %cst_132 = arith.constant 3.200000e+01 : f32
    %322 = vector.broadcast %cst_132 : f32 to vector<16x1xf32>
    %323 = arith.divf %321, %322 : vector<16x1xf32>
    %324 = vector.broadcast %323 : vector<16x1xf32> to vector<16x32xf32>
    %325 = arith.subf %315, %324 : vector<16x32xf32>
    %326 = arith.mulf %325, %325 : vector<16x32xf32>
    %cst_133 = arith.constant dense<0.000000e+00> : vector<16xf32>
    %327 = vector.multi_reduction <add>, %326, %cst_133 [1] : vector<16x32xf32> to vector<16xf32>
    %328 = vector.shape_cast %327 : vector<16xf32> to vector<16x1xf32>
    %cst_134 = arith.constant 3.200000e+01 : f32
    %329 = vector.broadcast %cst_134 : f32 to vector<16x1xf32>
    %330 = arith.divf %328, %329 : vector<16x1xf32>
    %cst_135 = arith.constant 9.99999996E-13 : f32
    %331 = vector.broadcast %cst_135 : f32 to vector<16x1xf32>
    %332 = arith.addf %330, %331 : vector<16x1xf32>
    %333 = math.rsqrt %332 : vector<16x1xf32>
    %334 = vector.broadcast %333 : vector<16x1xf32> to vector<16x32xf32>
    %335 = arith.mulf %325, %334 : vector<16x32xf32>
    %336 = vector.broadcast %317 : vector<1x32xf32> to vector<16x32xf32>
    %337 = arith.mulf %335, %336 : vector<16x32xf32>
    %338 = vector.broadcast %319 : vector<1x32xf32> to vector<16x32xf32>
    %339 = arith.addf %337, %338 : vector<16x32xf32>
    %340 = vector.extract_strided_slice %339 {offsets = [0, 0], sizes = [1, 32], strides = [1, 1]} : vector<16x32xf32> to vector<1x32xf32>
    %341 = vector.extract_strided_slice %339 {offsets = [8, 0], sizes = [1, 32], strides = [1, 1]} : vector<16x32xf32> to vector<1x32xf32>
    %342 = tpu.concatenate %340, %341 in 0 : vector<1x32xf32>, vector<1x32xf32> -> vector<2x32xf32>
    %343 = arith.truncf %342 : vector<2x32xf32> to vector<2x32xbf16>
    %c0_136 = arith.constant 0 : index
    %c0_137 = arith.constant 0 : index
    %344 = vector.load %arg18[%c0_136, %c0_137] : memref<32x32xbf16, #tpu.memory_space<vmem>>, vector<32x32xbf16>
    %cst_138 = arith.constant dense<0.000000e+00> : vector<2x32xf32>
    %345 = tpu.matmul %343, %344, %cst_138 {dimension_numbers = #tpu.dot_dimension_numbers<[1], [0], [0], [1], [0, 0, 1, 1], [], []>} : vector<2x32xbf16>, vector<32x32xbf16>, vector<2x32xf32> -> vector<2x32xf32>
    %c0_139 = arith.constant 0 : index
    %c0_140 = arith.constant 0 : index
    %346 = vector.load %arg19[%c0_139, %c0_140] : memref<1x32xf32, #tpu.memory_space<vmem>>, vector<1x32xf32>
    %347 = vector.broadcast %346 : vector<1x32xf32> to vector<2x32xf32>
    %348 = arith.addf %345, %347 : vector<2x32xf32>
    %349 = math.tanh %348 : vector<2x32xf32>
    %350 = arith.truncf %349 : vector<2x32xf32> to vector<2x32xbf16>
    %c0_141 = arith.constant 0 : index
    %c0_142 = arith.constant 0 : index
    %351 = vector.load %arg20[%c0_141, %c0_142] : memref<32x128xbf16, #tpu.memory_space<vmem>>, vector<32x128xbf16>
    %cst_143 = arith.constant dense<0.000000e+00> : vector<2x128xf32>
    %352 = tpu.matmul %350, %351, %cst_143 {dimension_numbers = #tpu.dot_dimension_numbers<[1], [0], [0], [1], [0, 0, 1, 1], [], []>} : vector<2x32xbf16>, vector<32x128xbf16>, vector<2x128xf32> -> vector<2x128xf32>
    %c0_144 = arith.constant 0 : index
    %c0_145 = arith.constant 0 : index
    %353 = vector.load %arg21[%c0_144, %c0_145] : memref<1x128xf32, #tpu.memory_space<vmem>>, vector<1x128xf32>
    %354 = vector.broadcast %353 : vector<1x128xf32> to vector<2x128xf32>
    %355 = arith.addf %352, %354 : vector<2x128xf32>
    %c0_146 = arith.constant 0 : index
    %c0_147 = arith.constant 0 : index
    %356 = vector.load %arg22[%c0_146, %c0_147] : memref<2x128xf32, #tpu.memory_space<vmem>>, vector<2x128xf32>
    tpu.vector_store %arg22[%c0_146, %c0_147], %355 {strides = array<i32>} : memref<2x128xf32, #tpu.memory_space<vmem>>, vector<2x128xf32>,
    return
  }
}

</mosaic_0001>

<bundles_post_ra>
// kernel: tpu_custom_call.1
= control target key start
LH: loop header
LB: loop body
LE: loop exit
PB: predicated region body
PF: predicated region fallthrough
CT: control target
= control target key end

     0   :  { %s3530_s0 = inlined_call_operand.hbm [shape: f32[2,8,32], index: 0, kind: input, shape index: {}]   ;;  %s3531_s1 = inlined_call_operand.hbm [shape: f32[1,8,32], index: 1, kind: input, shape index: {}]   ;;  %s3532_s2 = inlined_call_operand.vmem [shape: f32[1,1,32], index: 2, kind: input, shape index: {}]   ;;  %s3533_s3 = inlined_call_operand.hbm [shape: f32[2,1,8], index: 3, kind: input, shape index: {}]   ;;  %s3534_s4 = inlined_call_operand.hbm [shape: f32[1,32], index: 4, kind: input, shape index: {}]   ;;  %s3535_s5 = inlined_call_operand.hbm [shape: f32[1,32], index: 5, kind: input, shape index: {}]   ;;  %s3536_s6 = inlined_call_operand.vmem [shape: bf16[2,32,96], index: 6, kind: input, shape index: {}]   ;;  %s3537_s7 = inlined_call_operand.hbm [shape: f32[2,1,96], index: 7, kind: input, shape index: {}]   ;;  %s3538_s8 = inlined_call_operand.vmem [shape: bf16[2,32,32], index: 8, kind: input, shape index: {}]   ;;  %s3539_s9 = inlined_call_operand.hbm [shape: f32[2,1,32], index: 9, kind: input, shape index: {}]   ;;  %s3540_s10 = inlined_call_operand.hbm [shape: f32[2,1,32], index: 10, kind: input, shape index: {}]   ;;  %s3541_s11 = inlined_call_operand.hbm [shape: f32[2,1,32], index: 11, kind: input, shape index: {}]   ;;  %s3542_s12 = inlined_call_operand.vmem [shape: bf16[2,32,64], index: 12, kind: input, shape index: {}]   ;;  %s3543_s13 = inlined_call_operand.hbm [shape: f32[2,1,64], index: 13, kind: input, shape index: {}]   ;;  %s3544_s14 = inlined_call_operand.vmem [shape: bf16[2,64,32], index: 14, kind: input, shape index: {}]   ;;  %s3545_s15 = inlined_call_operand.hbm [shape: f32[2,1,32], index: 15, kind: input, shape index: {}]   ;;  %s3546_s16 = inlined_call_operand.hbm [shape: f32[2,1,32], index: 16, kind: input, shape index: {}]   ;;  %s3547_s17 = inlined_call_operand.hbm [shape: f32[2,1,32], index: 17, kind: input, shape index: {}]   ;;  %s3548_s18 = inlined_call_operand.vmem [shape: bf16[32,32], index: 18, kind: input, shape index: {}]   ;;  %s3549_s19 = inlined_call_operand.hbm [shape: f32[1,32], index: 19, kind: input, shape index: {}]   ;;  %s3550_s20 = inlined_call_operand.hbm [shape: bf16[32,128], index: 20, kind: input, shape index: {}]   ;;  %s3551_s21 = inlined_call_operand.vmem [shape: f32[1,128], index: 21, kind: input, shape index: {}]   ;;  %s3552_s22 = inlined_call_operand.hbm [shape: f32[2,128], index: 22, kind: output, shape index: {}]  }
   0x1   :  { %3554 = sst [smem:[#allocation36_spill]] %s3530_s0 }
   0x2   :  { %3555 = sst [smem:[#allocation37_spill]] %s3531_s1 }
   0x3   :  { %3556 = sst [smem:[#allocation38_spill]] %s3532_s2 }
   0x4   :  { %3557 = sst [smem:[#allocation39_spill]] %s3533_s3 }
   0x5   :  { %3558 = sst [smem:[#allocation40_spill]] %s3534_s4 }
   0x6   :  { %3559 = sst [smem:[#allocation41_spill]] %s3535_s5 }
   0x7   :  { %3560 = sst [smem:[#allocation42_spill]] %s3536_s6 }
   0x8   :  { %3561 = sst [smem:[#allocation43_spill]] %s3552_s22 }
   0x9   :  { %27 = vsyncpa [#allocation3], 0 }
   0xa   :  { %28 = vsyncpa [#allocation6], 0 }
   0xb   :  { %29 = vsyncpa [#allocation9], 0 }
   0xc   :  { %30 = vsyncpa [#allocation12], 0 }
   0xd   :  { %31 = vsyncpa [#allocation15], 0 }
   0xe   :  { %32 = vsyncpa [#allocation18], 0 }
   0xf   :  { %33 = vsyncpa [#allocation21], 0 }
  0x10   :  { %34 = vsyncpa [#allocation24], 0  ;;  %s3562_s29 = sld [smem:[#allocation37_spill]] }
  0x16   :  { %s54_s30 = sshll.u32 %s3562_s29, 4  ;;  %s55_s30 = int_to_ptr.hbm [resolvable:$true] %s54_s30 }
  0x17   :  { %35 = vsyncpa [#allocation4], 0  ;;  %s2929_s4 = smov [#allocation5]   ;;  %s3563_s5 = sld [smem:[#allocation40_spill]] }
  0x18   :  { %s56_s0 = sshll.u32 %s2929_s4, 4  ;;  %s2930_s6 = smov [#allocation8]   ;;  %s57_s0 = int_to_ptr.vmem [resolvable:$true] %s56_s0 }
  0x19   :  { %59 = dma.hbm_to_vmem [thread:$0]  %s55_s30, 128, %s57_s0, [#allocation6]  }
  0x1a   :  { %s82_s25 = sshll.u32 %s2930_s6, 4  ;;  %s103_s27 = sshll.u32 %s3537_s7, 4  ;;  %s83_s25 = int_to_ptr.vmem [resolvable:$true] %s82_s25  ;;  %s104_s27 = int_to_ptr.hbm [resolvable:$true] %s103_s27 }
  0x1b   :  { %s2931_s3 = smov [#allocation11]   ;;  %s131_s22 = sshll.u32 %s3540_s10, 4  ;;  %s132_s22 = int_to_ptr.hbm [resolvable:$true] %s131_s22 }
  0x1c   :  { %s105_s28 = sshll.u32 %s2931_s3, 4  ;;  %s2932_s23 = smov 16   ;;  %s106_s28 = int_to_ptr.vmem [resolvable:$true] %s105_s28 }
  0x1d   :  { %s80_s24 = sshll.u32 %s3563_s5, 4  ;;  %s2933_s1 = smov 1   ;;  %s81_s24 = int_to_ptr.hbm [resolvable:$true] %s80_s24 }
  0x1e   :  { %85 = dma.hbm_to_vmem [thread:$0]  %s81_s24, 16, %s83_s25, [#allocation9]  }
  0x1f   :  { %111 = dma.hbm_to_vmem [thread:$0]  %s104_s27, 32, %s106_s28, [#allocation12], %s2932_s23, %s2932_s23, %s2933_s1  }
  0x20   :  { %s2934_s30 = smov [#allocation14]   ;;  %s159_s7 = sshll.u32 %s3543_s13, 4  ;;  %s160_s7 = int_to_ptr.hbm [resolvable:$true] %s159_s7 }
  0x21   :  { %s133_s0 = sshll.u32 %s2934_s30, 4  ;;  %s187_s25 = sshll.u32 %s3546_s16, 4  ;;  %s134_s0 = int_to_ptr.vmem [resolvable:$true] %s133_s0  ;;  %s188_s25 = int_to_ptr.hbm [resolvable:$true] %s187_s25 }
  0x22   :  { %139 = dma.hbm_to_vmem [thread:$0]  %s132_s22, 32, %s134_s0, [#allocation15], %s2932_s23, %s2932_s23, %s2933_s1  }
  0x23   :  { %s2935_s26 = smov [#allocation17]   ;;  %s2936_s27 = smov [#allocation20]  }
  0x24   :  { %s161_s2 = sshll.u32 %s2935_s26, 4  ;;  %s189_s13 = sshll.u32 %s2936_s27, 4  ;;  %s162_s2 = int_to_ptr.vmem [resolvable:$true] %s161_s2  ;;  %s190_s13 = int_to_ptr.vmem [resolvable:$true] %s189_s13 }
  0x25   :  { %167 = dma.hbm_to_vmem [thread:$0]  %s160_s7, 32, %s162_s2, [#allocation18], %s2932_s23, %s2932_s23, %s2933_s1  }
  0x26   :  { %s216_s29 = sshll.u32 %s3549_s19, 4  ;;  %s3564_s4 = sld [smem:[#allocation36_spill]]  ;;  %s217_s29 = int_to_ptr.hbm [resolvable:$true] %s216_s29 }
  0x27   :  { %195 = dma.hbm_to_vmem [thread:$0]  %s188_s25, 32, %s190_s13, [#allocation21], %s2932_s23, %s2932_s23, %s2933_s1  }
  0x28   :  { %s2937_s0 = smov [#allocation23]   ;;  %s2938_s24 = smov [#allocation2]  }
  0x29   :  { %s218_s5 = sshll.u32 %s2937_s0, 4  ;;  %s42_s7 = sshll.u32 %s2938_s24, 4  ;;  %s219_s5 = int_to_ptr.vmem [resolvable:$true] %s218_s5  ;;  %s43_s7 = int_to_ptr.vmem [resolvable:$true] %s42_s7 }
  0x2a   :  { %221 = dma.hbm_to_vmem [thread:$0]  %s217_s29, 16, %s219_s5, [#allocation24]  }
  0x2b   :  { %s2939_s10 = smov 128   ;;  %s2940_s19 = smov 8  }
  0x2c   :  { %s40_s30 = sshll.u32 %s3564_s4, 4  ;;  %s3565_s2 = sld [smem:[#allocation39_spill]]  ;;  %s41_s30 = int_to_ptr.hbm [resolvable:$true] %s40_s30 }
  0x2d   :  { %48 = dma.hbm_to_vmem [thread:$0]  %s41_s30, 256, %s43_s7, [#allocation3], %s2939_s10, %s2939_s10, %s2940_s19  }
  0x2e   :  { %s2941_s27 = smov [#allocation7]   ;;  %s3566_s16 = sld [smem:[#allocation41_spill]] }
  0x2f   :  { %s68_s13 = sshll.u32 %s2941_s27, 4  ;;  %s2942_s29 = smov [#allocation10]   ;;  %s69_s13 = int_to_ptr.vmem [resolvable:$true] %s68_s13 }
  0x30   :  { %s93_s4 = sshll.u32 %s2942_s29, 4  ;;  %s118_s5 = sshll.u32 %s3539_s9, 4  ;;  %s94_s4 = int_to_ptr.vmem [resolvable:$true] %s93_s4  ;;  %s119_s5 = int_to_ptr.hbm [resolvable:$true] %s118_s5 }
  0x31   :  { %s144_s10 = sshll.u32 %s3541_s11, 4  ;;  %s2943_s6 = smov [#allocation13]   ;;  %s145_s10 = int_to_ptr.hbm [resolvable:$true] %s144_s10 }
  0x32   :  { %s66_s25 = sshll.u32 %s3565_s2, 4  ;;  %s120_s26 = sshll.u32 %s2943_s6, 4  ;;  %s67_s25 = int_to_ptr.hbm [resolvable:$true] %s66_s25  ;;  %s121_s26 = int_to_ptr.vmem [resolvable:$true] %s120_s26 }
  0x33   :  { %74 = dma.hbm_to_vmem [thread:$0]  %s67_s25, 32, %s69_s13, [#allocation6], %s2932_s23, %s2932_s23, %s2933_s1  }
  0x34   :  { %s91_s22 = sshll.u32 %s3566_s16, 4  ;;  %s2944_s2 = smov [#allocation16]   ;;  %s92_s22 = int_to_ptr.hbm [resolvable:$true] %s91_s22 }
  0x35   :  { %96 = dma.hbm_to_vmem [thread:$0]  %s92_s22, 16, %s94_s4, [#allocation9]  }
  0x36   :  { %126 = dma.hbm_to_vmem [thread:$0]  %s119_s5, 32, %s121_s26, [#allocation12], %s2932_s23, %s2932_s23, %s2933_s1  }
  0x37   :  { %s146_s25 = sshll.u32 %s2944_s2, 4  ;;  %s174_s9 = sshll.u32 %s3545_s15, 4  ;;  %s147_s25 = int_to_ptr.vmem [resolvable:$true] %s146_s25  ;;  %s175_s9 = int_to_ptr.hbm [resolvable:$true] %s174_s9 }
  0x38   :  { %152 = dma.hbm_to_vmem [thread:$0]  %s145_s10, 32, %s147_s25, [#allocation15], %s2932_s23, %s2932_s23, %s2933_s1  }
  0x39   :  { %s200_s28 = sshll.u32 %s3547_s17, 4  ;;  %s2945_s16 = smov [#allocation19]   ;;  %s201_s28 = int_to_ptr.hbm [resolvable:$true] %s200_s28 }
  0x3a   :  { %s176_s22 = sshll.u32 %s2945_s16, 4  ;;  %s2946_s29 = smov [#allocation22]   ;;  %s177_s22 = int_to_ptr.vmem [resolvable:$true] %s176_s22 }
  0x3b   :  { %182 = dma.hbm_to_vmem [thread:$0]  %s175_s9, 32, %s177_s22, [#allocation18], %s2932_s23, %s2932_s23, %s2933_s1  }
  0x3c   :  { %s202_s15 = sshll.u32 %s2946_s29, 4  ;;  %s226_s0 = sshll.u32 %s3550_s20, 4  ;;  %s203_s15 = int_to_ptr.vmem [resolvable:$true] %s202_s15  ;;  %s227_s0 = int_to_ptr.hbm [resolvable:$true] %s226_s0 }
  0x3d   :  { %208 = dma.hbm_to_vmem [thread:$0]  %s201_s28, 32, %s203_s15, [#allocation21], %s2932_s23, %s2932_s23, %s2933_s1  }
  0x3e   :  { %s2947_s17 = smov [#allocation25]   ;;  %s2948_s24 = smov 64  }
  0x3f   :  { %s228_s5 = sshll.u32 %s2947_s17, 4  ;;  %s2949_s7 = smov 4   ;;  %s229_s5 = int_to_ptr.vmem [resolvable:$true] %s228_s5 }
  0x40   :  { %234 = dma.hbm_to_vmem [thread:$0]  %s227_s0, 256, %s229_s5, [#allocation24], %s2948_s24, %s2948_s24, %s2949_s7  }
  0x41   :  { %2911 = dma.done.wait [#allocation3], 256  }
  0x42   :  { %2912 = vsyncadd [#allocation3], 4294967040 }
  0x43   :  { %2913 = dma.done.wait [#allocation6], 160  }
  0x44   :  { %2914 = vsyncadd [#allocation6], 4294967136 }
  0x45   :  { %2915 = dma.done.wait [#allocation9], 32  }
  0x46   :  { %2916 = vsyncadd [#allocation9], 4294967264 }
  0x47   :  { %2917 = dma.done.wait [#allocation12], 64  }
  0x48   :  { %2918 = vsyncadd [#allocation12], 4294967232 }
  0x49   :  { %2919 = dma.done.wait [#allocation15], 64  }
  0x4a   :  { %2920 = vsyncadd [#allocation15], 4294967232 }
  0x4b   :  { %2921 = dma.done.wait [#allocation18], 64  }
  0x4c   :  { %2922 = vsyncadd [#allocation18], 4294967232 }
  0x4d   :  { %2923 = dma.done.wait [#allocation21], 64  }
  0x4e   :  { %2924 = vsyncadd [#allocation21], 4294967232 }
  0x4f   :  { %2925 = dma.done.wait [#allocation24], 272  }
  0x50   :  { %2926 = vsyncadd [#allocation24], 4294967024  ;;  %v298_v0 = vld [vmem:[#allocation2] sm:$0xff]  ;;  %v300_v1 = vld [vmem:[#allocation5] sm:$0xff]  ;;  %s3567_s10 = sld [smem:[#allocation38_spill]]  ;;  %vm311_vm0 = vcmask 261120  }
  0x51   :  { %v301_v2 = vadd.f32 %v300_v1, %v298_v0  ;;  %v299_v4 = vld [vmem:[#allocation2 + $0x8] sm:$0xff]  ;;  %v2950_v10 = vmov 32.0   ;;  %s3568_s2 = sld [smem:[#allocation42_spill]]  ;;  %v2408_v48 = vld [vmem:[#allocation8] ss:$0 sm:$0xff]  ;;  %s2951_s13 = smov 104  }
  0x52   :  { %v302_v6 = vadd.f32 %v300_v1, %v299_v4  ;;  %2430 = vrcp.f32 %v2950_v10  ;;  %v2409_v53 = vld [vmem:[#allocation10] ss:$0 sm:$0xff]  ;;  %v2410_v58 = vld [vmem:[#allocation11] ss:$0 sm:$0xff]  ;;  %s2952_s9 = smov 120   ;;  %s2953_s11 = smov 112  }
  0x53   :  { %s2954_s3 = smov 96   ;;  %vm446_vm8 = vcmask 64512   ;;  %vm757_vm9 = vcmask 1043456   ;;  %s2955_s28 = smov 24   ;;  %vm947_vm10 = vcmask 130048   ;;  %vm950_vm11 = vcmask 195584  }
  0x54   :  { %s3569_s27 = sld [smem:[#allocation43_spill]] }
  0x56   :  { %v2407_v3 = vld [vmem:[%s3567_s10] ss:$0 sm:$0xff]  ;;  %s2956_s10 = smov [#allocation26]  }
  0x57   :  { %v307_v5 = vadd.f32 %v2407_v3, %v301_v2  ;;  %v308_v8 = vadd.f32 %v2407_v3, %v302_v6  ;;  %v2326_v27 = vld [vmem:[%s3568_s2 + $0x8] sm:$0xff]  ;;  %v2325_v29 = vld [vmem:[%s3568_s2] sm:$0xff]  ;;  %s2148_s6 = sshll.u32 %s2956_s10, 4  ;;  %s2149_s6 = int_to_ptr.vmem [resolvable:$true] %s2148_s6 }
  0x58   :  { %v2431_v11 = vpop.eup %2430  ;;  %405 = vmatpush.bf16.msra.mxu0 %v2326_v27 }
  0x59   :  { %v312_v7 = vsel %vm311_vm0, %v307_v5, 0.0  ;;  %v315_v9 = vsel %vm311_vm0, %v308_v8, 0.0  ;;  %v319_v12 = vmul.f32 32.0, %v2431_v11  ;;  %vm323_vm1 = vweird.f32 %v2431_v11 }
  0x5a   :  { %313 = vadd.xlane.f32.xlu0 %v312_v7  ;;  %s2150_s16 = sshll.u32 %s3569_s27, 4  ;;  %s2151_s16 = int_to_ptr.hbm [resolvable:$true] %s2150_s16 }
  0x5b   :  { %v320_v13 = vsub.f32 1.0, %v319_v12 }
  0x5c   :  { %406 = vmatpush.bf16.msra.mxu0 %v2325_v29 }
  0x5d   :  { %v321_v14 = vmul.f32 %v2431_v11, %v320_v13 }
  0x5f   :  { %v322_v15 = vadd.f32 %v2431_v11, %v321_v14 }
  0x61   :  { %v3152_v16 = vsel %vm323_vm1, %v2431_v11, %v322_v15 }
  0x62   :  { %316 = vadd.xlane.f32.xlu0 %v315_v9 }
  0xcd   :  { %v314_v17 = vpop.xlane.xlu0 %313 }
  0xce   :  { %v325_v18 = vmul.f32 %v3152_v16, %v314_v17 }
  0xd0   :  { %v327_v19 = vsub.f32 %v307_v5, %v325_v18 }
  0xd2   :  { %v329_v20 = vmul.f32 %v327_v19, %v327_v19 }
  0xd4   :  { %v331_v21 = vsel %vm311_vm0, %v329_v20, 0.0 }
  0xd5   :  { %332 = vadd.xlane.f32.xlu1 %v331_v21  ;;  %v317_v22 = vpop.xlane.xlu0 %316 }
  0xd6   :  { %v326_v23 = vmul.f32 %v3152_v16, %v317_v22 }
  0xd8   :  { %v328_v24 = vsub.f32 %v308_v8, %v326_v23 }
  0xda   :  { %v330_v25 = vmul.f32 %v328_v24, %v328_v24 }
  0xdc   :  { %v334_v26 = vsel %vm311_vm0, %v330_v25, 0.0 }
  0xdd   :  { %335 = vadd.xlane.f32.xlu1 %v334_v26 }
 0x148   :  { %v333_v28 = vpop.xlane.xlu1 %332 }
 0x149   :  { %v337_v30 = vmul.f32 %v333_v28, %v3152_v16 }
 0x14b   :  { %v339_v31 = vadd.f32 1e-12, %v337_v30 }
 0x14d   :  { %2432 = vrsqrt.f32 %v339_v31  ;;  %vm347_vm3 = vweird.f32 %v339_v31 }
 0x150   :  { %v336_v32 = vpop.xlane.xlu1 %335 }
 0x151   :  { %v338_v33 = vmul.f32 %v336_v32, %v3152_v16 }
 0x153   :  { %v2433_v34 = vpop.eup %2432  ;;  %v340_v35 = vadd.f32 1e-12, %v338_v33 }
 0x154   :  { %v342_v36 = vmul.f32 %v2433_v34, %v339_v31  ;;  %vm348_vm2 = vweird.f32 %v2433_v34 }
 0x155   :  { %2434 = vrsqrt.f32 %v340_v35  ;;  %vm349_vm4 = vmor %vm347_vm3, %vm348_vm2  ;;  %vm357_vm6 = vweird.f32 %v340_v35  ;;  %vm1142_vm3 = vcmask 523264  }
 0x156   :  { %v343_v37 = vmul.f32 %v2433_v34, %v342_v36 }
 0x158   :  { %v344_v38 = vmul.f32 0.5, %v343_v37 }
 0x15a   :  { %v345_v39 = vsub.f32 1.5, %v344_v38 }
 0x15b   :  { %v2435_v40 = vpop.eup %2434 }
 0x15c   :  { %v346_v41 = vmul.f32 %v2433_v34, %v345_v39  ;;  %v352_v42 = vmul.f32 %v2435_v40, %v340_v35  ;;  %vm358_vm5 = vweird.f32 %v2435_v40 }
 0x15d   :  { %vm359_vm7 = vmor %vm357_vm6, %vm358_vm5 }
 0x15e   :  { %v353_v43 = vmul.f32 %v2435_v40, %v352_v42  ;;  %v350_v44 = vsel %vm349_vm4, %v2433_v34, %v346_v41 }
 0x15f   :  { %v361_v47 = vmul.f32 %v350_v44, %v327_v19 }
 0x160   :  { %v354_v45 = vmul.f32 0.5, %v353_v43 }
 0x161   :  { %v366_v52 = vmul.f32 %v2408_v48, %v361_v47 }
 0x162   :  { %v355_v46 = vsub.f32 1.5, %v354_v45 }
 0x163   :  { %v3166_v55 = vadd.f32 %v2409_v53, %v366_v52  ;;  %v3224_v52 = vld [vmem:[#allocation7 + $0x1] ss:$0 sm:$0xff] }
 0x164   :  { %v356_v49 = vmul.f32 %v2435_v40, %v355_v46 }
 0x166   :  { %v360_v50 = vsel %vm359_vm7, %v2435_v40, %v356_v49 }
 0x167   :  { %v362_v51 = vmul.f32 %v360_v50, %v328_v24 }
 0x169   :  { %v367_v54 = vmul.f32 %v2408_v48, %v362_v51 }
 0x16b   :  { %v3168_v56 = vadd.f32 %v2409_v53, %v367_v54 }
 0x16d   :  { %v375_v57 = vpack.c.bf16 %v3168_v56, %v3166_v55 }
 0x16f   :  { %2175 = vmatmul.msk.bf16.vlgmr.msra.gmra.mxu0 %vm311_vm0, %v375_v57  ;;  %v3226_v57 = vld [vmem:[#allocation7] ss:$0 sm:$0xff] }
 0x1ec   :  { %v408_v59 = vpop.f32.mrf.mxu0 }
 0x1ed   :  { %v409_v60 = vadd.f32 %v2410_v58, %v408_v59 }
 0x1ef   :  { %427 = vrot.lane.b32.xlu1 %v409_v60, %s2951_s13  ;;  %415 = vrot.lane.b32.xlu2 %v409_v60, %s2952_s9  ;;  %v433_v2 = vpack.c.bf16 %v409_v60, %v409_v60 }
 0x1f1   :  { %v442_v3 = vunpack.c.l.b16 %v433_v2 }
 0x1f3   :  { %v443_v4 = vpack.c.b16 %v442_v3, %v442_v3 }
 0x1f4   :  { %v410_v61 = vpop.f32.mrf.mxu0 }
 0x1f5   :  { %v411_v62 = vadd.f32 %v2410_v58, %v410_v61 }
 0x1f7   :  { %423 = vrot.lane.b32.xlu0 %v411_v62, %s2953_s11  ;;  %417 = vrot.lane.b32.xlu2 %v411_v62, %s2952_s9  ;;  %v434_v63 = vpack.c.bf16 %v411_v62, %v411_v62 }
 0x1f9   :  { %v467_v0 = vunpack.c.l.b16 %v434_v63 }
 0x1fb   :  { %v468_v1 = vpack.c.b16 %v467_v0, %v467_v0 }
 0x1ff   :  { %421 = vrot.lane.b32.xlu2 %v409_v60, %s2953_s11 }
 0x207   :  { %429 = vrot.lane.b32.xlu2 %v411_v62, %s2951_s13 }
 0x20f   :  { %469 = vrot.lane.b32.xlu2 %v468_v1, %s2954_s3 }
 0x217   :  { %444 = vrot.lane.b32.xlu2 %v443_v4, %s2954_s3 }
 0x249   :  { %v416_v5 = vpop.permute.xlu2 %415 }
 0x24a   :  { %v435_v6 = vpack.c.bf16 %v416_v5, %v416_v5 }
 0x24c   :  { %v491_v7 = vunpack.c.l.b16 %v435_v6 }
 0x24e   :  { %v492_v8 = vpack.c.b16 %v491_v7, %v491_v7 }
 0x250   :  { %493 = vrot.lane.b32.xlu0 %v492_v8, %s2954_s3 }
 0x251   :  { %v418_v9 = vpop.permute.xlu2 %417 }
 0x252   :  { %v436_v10 = vpack.c.bf16 %v418_v9, %v418_v9 }
 0x254   :  { %v515_v11 = vunpack.c.l.b16 %v436_v10 }
 0x256   :  { %v3182_v12 = vpack.c.b16 %v515_v11, %v515_v11 }
 0x258   :  { %517 = vrot.lane.b32.xlu1 %v3182_v12, %s2954_s3 }
 0x259   :  { %v422_v13 = vpop.permute.xlu2 %421 }
 0x25a   :  { %v437_v14 = vpack.c.bf16 %v422_v13, %v422_v13 }
 0x25c   :  { %v539_v15 = vunpack.c.l.b16 %v437_v14 }
 0x25e   :  { %v3186_v17 = vpack.c.b16 %v539_v15, %v539_v15 }
 0x260   :  { %541 = vrot.lane.b32.xlu1 %v3186_v17, %s2954_s3 }
 0x261   :  { %v428_v18 = vpop.permute.xlu1 %427  ;;  %v430_v19 = vpop.permute.xlu2 %429 }
 0x262   :  { %v439_v20 = vpack.c.bf16 %v428_v18, %v428_v18  ;;  %v440_v28 = vpack.c.bf16 %v430_v19, %v430_v19 }
 0x264   :  { %v587_v21 = vunpack.c.l.b16 %v439_v20  ;;  %v611_v31 = vunpack.c.l.b16 %v440_v28 }
 0x266   :  { %v3190_v22 = vpack.c.b16 %v587_v21, %v587_v21  ;;  %v3203_v33 = vpack.c.b16 %v611_v31, %v611_v31 }
 0x268   :  { %795 = vrot.lane.b32.xlu1 %v492_v8, %s2948_s24  ;;  %589 = vrot.lane.b32.xlu2 %v3190_v22, %s2954_s3 }
 0x269   :  { %v424_v23 = vpop.permute.xlu0 %423  ;;  %v470_v24 = vpop.permute.xlu2 %469 }
 0x26a   :  { %v438_v25 = vpack.c.bf16 %v424_v23, %v424_v23  ;;  %v475_v26 = vsel %vm446_vm8, %v470_v24, 0 }
 0x26b   :  { %484 = vmatpush.bf16.xpose.msra.mxu2 %v475_v26 }
 0x26c   :  { %v563_v27 = vunpack.c.l.b16 %v438_v25 }
 0x26e   :  { %v3196_v29 = vpack.c.b16 %v563_v27, %v563_v27 }
 0x270   :  { %565 = vrot.lane.b32.xlu0 %v3196_v29, %s2954_s3  ;;  %774 = vrot.lane.b32.xlu2 %v468_v1, %s2948_s24 }
 0x271   :  { %v445_v30 = vpop.permute.xlu2 %444 }
 0x272   :  { %2177 = vmatmul.msk.bf16.vlgmr.msra.gmra.mxu2 %vm446_vm8, %v434_v63  ;;  %v451_v32 = vsel %vm446_vm8, %v445_v30, 0 }
 0x273   :  { %460 = vmatpush.bf16.xpose.msra.mxu1 %v451_v32 }
 0x278   :  { %613 = vrot.lane.b32.xlu0 %v3203_v33, %s2954_s3 }
 0x27a   :  { %2176 = vmatmul.msk.bf16.vlgmr.msra.gmra.mxu1 %vm446_vm8, %v433_v2 }
 0x280   :  { %752 = vrot.lane.b32.xlu0 %v443_v4, %s2948_s24 }
 0x2c2   :  { %v494_v34 = vpop.permute.xlu0 %493  ;;  %v590_v35 = vpop.permute.xlu2 %589 }
 0x2c3   :  { %v499_v36 = vsel %vm446_vm8, %v494_v34, 0  ;;  %v595_v37 = vsel %vm446_vm8, %v590_v35, 0 }
 0x2c4   :  { %508 = vmatpush.bf16.xpose.msra.mxu3 %v499_v36 }
 0x2ca   :  { %v518_v38 = vpop.permute.xlu1 %517  ;;  %v775_v44 = vpop.permute.xlu2 %774 }
 0x2cb   :  { %2178 = vmatmul.msk.bf16.vlgmr.msra.gmra.mxu3 %vm446_vm8, %v435_v6  ;;  %v523_v39 = vsel %vm446_vm8, %v518_v38, 0  ;;  %v780_v47 = vsel %vm757_vm9, %v775_v44, 0 }
 0x2cc   :  { %604 = vmatpush.bf16.xpose.msrb.mxu3 %v595_v37  ;;  %532 = vmatpush.bf16.xpose.msrb.mxu0 %v523_v39 }
 0x2d2   :  { %v542_v40 = vpop.permute.xlu1 %541 }
 0x2d3   :  { %2179 = vmatmul.msk.bf16.vlgmr.msrb.gmra.mxu0 %vm446_vm8, %v436_v10  ;;  %v547_v41 = vsel %vm446_vm8, %v542_v40, 0 }
 0x2d4   :  { %556 = vmatpush.bf16.xpose.msrb.mxu1 %v547_v41 }
 0x2da   :  { %v796_v42 = vpop.permute.xlu1 %795 }
 0x2db   :  { %v801_v43 = vsel %vm757_vm9, %v796_v42, 0  ;;  %2180 = vmatmul.msk.bf16.vlgmr.msrb.gmra.mxu1 %vm446_vm8, %v437_v14  ;;  %2182 = vmatmul.msk.bf16.vlgmr.msrb.gmra.mxu3 %vm446_vm8, %v439_v20 }
 0x2dc   :  { %810 = vmatpush.bf16.msra.mxu3 %v801_v43 }
 0x2e2   :  { %v566_v45 = vpop.permute.xlu0 %565 }
 0x2e3   :  { %v571_v46 = vsel %vm446_vm8, %v566_v45, 0 }
 0x2e4   :  { %580 = vmatpush.bf16.xpose.msrb.mxu2 %v571_v46 }
 0x2ea   :  { %v614_v48 = vpop.permute.xlu0 %613 }
 0x2eb   :  { %v619_v49 = vsel %vm446_vm8, %v614_v48, 0  ;;  %2181 = vmatmul.msk.bf16.vlgmr.msrb.gmra.mxu2 %vm446_vm8, %v438_v25 }
 0x2ec   :  { %789 = vmatpush.bf16.msra.mxu2 %v780_v47  ;;  %628 = vmatpush.bf16.xpose.msra.mxu0 %v619_v49 }
 0x2f2   :  { %v753_v50 = vpop.permute.xlu0 %752 }
 0x2f3   :  { %v759_v51 = vsel %vm757_vm9, %v753_v50, 0  ;;  %2183 = vmatmul.msk.bf16.vlgmr.msra.gmra.mxu0 %vm446_vm8, %v440_v28 }
 0x2f4   :  { %768 = vmatpush.bf16.msra.mxu1 %v759_v51 }
 0x2f5   :  { %v486_v53 = vpop.f32.mrf.mxu2 }
 0x2f6   :  { %v635_v54 = vmul.f32 0.35355338, %v486_v53 }
 0x2f7   :  { %v462_v58 = vpop.f32.mrf.mxu1 }
 0x2f8   :  { %v634_v59 = vmul.f32 0.35355338, %v462_v58  ;;  %v649_v60 = vadd.f32 %v3224_v52, %v635_v54 }
 0x2fa   :  { %v659_v61 = vsel %vm446_vm8, %v649_v60, -inf  ;;  %v648_v62 = vadd.f32 %v3226_v57, %v634_v59 }
 0x2fb   :  { %660 = vmax.xlane.f32.xlu2 %v659_v61 }
 0x2fc   :  { %v656_v63 = vsel %vm446_vm8, %v648_v62, -inf }
 0x2fd   :  { %v488_v0 = vpop.f32.mrf.mxu2  ;;  %657 = vmax.xlane.f32.xlu0 %v656_v63 }
 0x2ff   :  { %v464_v1 = vpop.f32.mrf.mxu1 }
 0x34e   :  { %v510_v2 = vpop.f32.mrf.mxu3 }
 0x34f   :  { %v636_v3 = vmul.f32 0.35355338, %v510_v2 }
 0x350   :  { %v534_v4 = vpop.f32.mrf.mxu0 }
 0x351   :  { %v650_v5 = vadd.f32 %v3226_v57, %v636_v3  ;;  %v637_v13 = vmul.f32 0.35355338, %v534_v4 }
 0x353   :  { %v662_v6 = vsel %vm446_vm8, %v650_v5, -inf  ;;  %v651_v21 = vadd.f32 %v3224_v52, %v637_v13 }
 0x354   :  { %663 = vmax.xlane.f32.xlu1 %v662_v6 }
 0x355   :  { %v665_v24 = vsel %vm446_vm8, %v651_v21, -inf }
 0x356   :  { %v512_v7 = vpop.f32.mrf.mxu3 }
 0x358   :  { %v536_v8 = vpop.f32.mrf.mxu0  ;;  %v558_v9 = vpop.f32.mrf.mxu1 }
 0x359   :  { %v638_v10 = vmul.f32 0.35355338, %v558_v9 }
 0x35b   :  { %v652_v11 = vadd.f32 %v3226_v57, %v638_v10 }
 0x35d   :  { %v668_v14 = vsel %vm446_vm8, %v652_v11, -inf }
 0x35e   :  { %669 = vmax.xlane.f32.xlu2 %v668_v14  ;;  %v606_v15 = vpop.f32.mrf.mxu3 }
 0x35f   :  { %v640_v18 = vmul.f32 0.35355338, %v606_v15 }
 0x360   :  { %v560_v19 = vpop.f32.mrf.mxu1 }
 0x361   :  { %v654_v20 = vadd.f32 %v3226_v57, %v640_v18 }
 0x363   :  { %v674_v23 = vsel %vm446_vm8, %v654_v20, -inf }
 0x364   :  { %675 = vmax.xlane.f32.xlu0 %v674_v23 }
 0x366   :  { %666 = vmax.xlane.f32.xlu2 %v665_v24  ;;  %v608_v25 = vpop.f32.mrf.mxu3 }
 0x36e   :  { %v582_v26 = vpop.f32.mrf.mxu2  ;;  %v661_v27 = vpop.xlane.xlu2 %660 }
 0x36f   :  { %v681_v28 = vsub.f32 %v649_v60, %v661_v27  ;;  %v639_v41 = vmul.f32 0.35355338, %v582_v26 }
 0x370   :  { %v630_v30 = vpop.f32.mrf.mxu0  ;;  %v658_v31 = vpop.xlane.xlu0 %657 }
 0x371   :  { %v690_v32 = vmul.f32 1.442695, %v681_v28  ;;  %v680_v34 = vsub.f32 %v648_v62, %v658_v31  ;;  %v653_v43 = vadd.f32 %v3224_v52, %v639_v41  ;;  %v641_v44 = vmul.f32 0.35355338, %v630_v30 }
 0x373   :  { %2436 = vpow2.f32 %v690_v32  ;;  %v688_v35 = vmul.f32 1.442695, %v680_v34  ;;  %v671_v45 = vsel %vm446_vm8, %v653_v43, -inf  ;;  %v655_v46 = vadd.f32 %v3224_v52, %v641_v44 }
 0x375   :  { %2438 = vpow2.f32 %v688_v35  ;;  %v677_v47 = vsel %vm446_vm8, %v655_v46, -inf }
 0x376   :  { %v584_v36 = vpop.f32.mrf.mxu2 }
 0x378   :  { %v632_v37 = vpop.f32.mrf.mxu0 }
 0x379   :  { %v2437_v38 = vpop.eup %2436 }
 0x37a   :  { %v707_v39 = vsel %vm446_vm8, %v2437_v38, 0.0 }
 0x37b   :  { %v2439_v40 = vpop.eup %2438  ;;  %708 = vadd.xlane.f32.xlu0 %v707_v39 }
 0x37c   :  { %v704_v42 = vsel %vm446_vm8, %v2439_v40, 0.0 }
 0x37d   :  { %705 = vadd.xlane.f32.xlu1 %v704_v42 }
 0x37e   :  { %816 = vrot.lane.b32.xlu2 %v3182_v12, %s2948_s24 }
 0x385   :  { %672 = vmax.xlane.f32.xlu1 %v671_v45 }
 0x38d   :  { %678 = vmax.xlane.f32.xlu1 %v677_v47 }
 0x3a6   :  { %858 = vrot.lane.b32.xlu1 %v3196_v29, %s2948_s24 }
 0x3c7   :  { %v664_v48 = vpop.xlane.xlu1 %663 }
 0x3c8   :  { %v682_v51 = vsub.f32 %v650_v5, %v664_v48 }
 0x3ca   :  { %v692_v12 = vmul.f32 1.442695, %v682_v51 }
 0x3d1   :  { %v670_v49 = vpop.xlane.xlu2 %669 }
 0x3d2   :  { %v684_v50 = vsub.f32 %v652_v11, %v670_v49 }
 0x3d4   :  { %v696_v53 = vmul.f32 1.442695, %v684_v50 }
 0x3d6   :  { %2440 = vpow2.f32 %v696_v53 }
 0x3d7   :  { %v676_v54 = vpop.xlane.xlu0 %675  ;;  %2442 = vpow2.f32 %v692_v12 }
 0x3d8   :  { %v686_v58 = vsub.f32 %v654_v20, %v676_v54 }
 0x3d9   :  { %v667_v59 = vpop.xlane.xlu2 %666 }
 0x3da   :  { %v700_v60 = vmul.f32 1.442695, %v686_v58  ;;  %v683_v61 = vsub.f32 %v651_v21, %v667_v59 }
 0x3dc   :  { %v3250_v62 = vpop.eup %2440  ;;  %2444 = vpow2.f32 %v700_v60  ;;  %v694_v63 = vmul.f32 1.442695, %v683_v61 }
 0x3dd   :  { %v716_v29 = vsel %vm446_vm8, %v3250_v62, 0.0  ;;  %v2443_v0 = vpop.eup %2442 }
 0x3de   :  { %2446 = vpow2.f32 %v694_v63  ;;  %717 = vadd.xlane.f32.xlu2 %v716_v29  ;;  %v710_v6 = vsel %vm446_vm8, %v2443_v0, 0.0 }
 0x3e1   :  { %v817_v1 = vpop.permute.xlu2 %816 }
 0x3e2   :  { %v2445_v2 = vpop.eup %2444  ;;  %v822_v3 = vsel %vm757_vm9, %v817_v1, 0 }
 0x3e3   :  { %831 = vmatpush.bf16.msrb.mxu0 %v822_v3  ;;  %v722_v4 = vsel %vm446_vm8, %v2445_v2, 0.0 }
 0x3e4   :  { %v2447_v5 = vpop.eup %2446  ;;  %723 = vadd.xlane.f32.xlu1 %v722_v4 }
 0x3e5   :  { %v713_v7 = vsel %vm446_vm8, %v2447_v5, 0.0 }
 0x3e6   :  { %711 = vadd.xlane.f32.xlu2 %v710_v6  ;;  %714 = vadd.xlane.f32.xlu0 %v713_v7 }
 0x3ee   :  { %v709_v8 = vpop.xlane.xlu0 %708 }
 0x3ef   :  { %2448 = vrcp.f32 %v709_v8 }
 0x3f0   :  { %v706_v9 = vpop.xlane.xlu1 %705 }
 0x3f1   :  { %2450 = vrcp.f32 %v706_v9 }
 0x3f5   :  { %v2449_v10 = vpop.eup %2448 }
 0x3f6   :  { %v737_v11 = vmul.f32 %v2449_v10, %v2437_v38 }
 0x3f7   :  { %v2451_v13 = vpop.eup %2450 }
 0x3f8   :  { %v745_v14 = vpack.c.bf16 %v737_v11, %v737_v11  ;;  %v736_v15 = vmul.f32 %v2451_v13, %v2439_v40  ;;  %v673_v18 = vpop.xlane.xlu1 %672 }
 0x3f9   :  { %v685_v19 = vsub.f32 %v653_v43, %v673_v18 }
 0x3fa   :  { %v744_v20 = vpack.c.bf16 %v736_v15, %v736_v15  ;;  %2185 = vmatmul.msk.bf16.vlgmr.msra.gmra.mxu2 %vm446_vm8, %v745_v14 }
 0x3fb   :  { %v698_v21 = vmul.f32 1.442695, %v685_v19 }
 0x3fc   :  { %2184 = vmatmul.msk.bf16.vlgmr.msra.gmra.mxu1 %vm446_vm8, %v744_v20 }
 0x3fd   :  { %2452 = vpow2.f32 %v698_v21  ;;  %900 = vrot.lane.b32.xlu1 %v3203_v33, %s2948_s24  ;;  %v2328_v21 = vld [vmem:[%s3538_s8 + $0x8] sm:$0xff] }
 0x3fe   :  { %879 = vrot.lane.b32.xlu2 %v3190_v22, %s2948_s24 }
 0x400   :  { %v679_v23 = vpop.xlane.xlu1 %678 }
 0x401   :  { %v687_v24 = vsub.f32 %v655_v46, %v679_v23  ;;  %v2327_v23 = vld [vmem:[%s3538_s8] sm:$0xff] }
 0x403   :  { %v2453_v25 = vpop.eup %2452  ;;  %v702_v26 = vmul.f32 1.442695, %v687_v24 }
 0x404   :  { %v719_v27 = vsel %vm446_vm8, %v2453_v25, 0.0 }
 0x405   :  { %2454 = vpow2.f32 %v702_v26  ;;  %720 = vadd.xlane.f32.xlu0 %v719_v27 }
 0x40b   :  { %v2455_v28 = vpop.eup %2454 }
 0x40c   :  { %v725_v30 = vsel %vm446_vm8, %v2455_v28, 0.0 }
 0x40d   :  { %726 = vadd.xlane.f32.xlu0 %v725_v30 }
 0x418   :  { %v859_v31 = vpop.permute.xlu1 %858 }
 0x419   :  { %v864_v32 = vsel %vm757_vm9, %v859_v31, 0 }
 0x41a   :  { %873 = vmatpush.bf16.msrb.mxu2 %v864_v32 }
 0x421   :  { %837 = vrot.lane.b32.xlu0 %v3186_v17, %s2948_s24 }
 0x451   :  { %v718_v22 = vpop.xlane.xlu2 %717 }
 0x457   :  { %v724_v42 = vpop.xlane.xlu1 %723 }
 0x459   :  { %v715_v33 = vpop.xlane.xlu0 %714  ;;  %v712_v34 = vpop.xlane.xlu2 %711 }
 0x45a   :  { %2456 = vrcp.f32 %v715_v33 }
 0x45b   :  { %2458 = vrcp.f32 %v712_v34 }
 0x45c   :  { %2460 = vrcp.f32 %v724_v42 }
 0x460   :  { %v2457_v35 = vpop.eup %2456 }
 0x461   :  { %v2459_v36 = vpop.eup %2458  ;;  %v739_v37 = vmul.f32 %v2457_v35, %v2447_v5  ;;  %v880_v38 = vpop.permute.xlu2 %879 }
 0x462   :  { %v738_v39 = vmul.f32 %v2459_v36, %v2443_v0  ;;  %v885_v40 = vsel %vm757_vm9, %v880_v38, 0  ;;  %v2461_v17 = vpop.eup %2460 }
 0x463   :  { %v747_v41 = vpack.c.bf16 %v739_v37, %v739_v37  ;;  %894 = vmatpush.bf16.msrb.mxu3 %v885_v40  ;;  %v742_v45 = vmul.f32 %v2461_v17, %v2445_v2  ;;  %v2413_v40 = vld [vmem:[#allocation13] ss:$0 sm:$0xff] }
 0x464   :  { %v746_v43 = vpack.c.bf16 %v738_v39, %v738_v39 }
 0x465   :  { %2187 = vmatmul.msk.bf16.vlgmr.msrb.gmra.mxu0 %vm446_vm8, %v747_v41  ;;  %v750_v47 = vpack.c.bf16 %v742_v45, %v742_v45 }
 0x466   :  { %2186 = vmatmul.msk.bf16.vlgmr.msra.gmra.mxu3 %vm446_vm8, %v746_v43 }
 0x46f   :  { %v901_v44 = vpop.permute.xlu1 %900 }
 0x470   :  { %v906_v46 = vsel %vm757_vm9, %v901_v44, 0 }
 0x471   :  { %915 = vmatpush.bf16.msra.mxu0 %v906_v46 }
 0x476   :  { %2190 = vmatmul.msk.bf16.vlgmr.msrb.gmra.mxu3 %vm446_vm8, %v750_v47 }
 0x478   :  { %v721_v48 = vpop.xlane.xlu0 %720 }
 0x479   :  { %2462 = vrcp.f32 %v721_v48  ;;  %v770_v49 = vpop.f32.mrf.mxu1 }
 0x47d   :  { %v791_v50 = vpop.f32.mrf.mxu2 }
 0x47f   :  { %v2463_v51 = vpop.eup %2462 }
 0x480   :  { %v741_v53 = vmul.f32 %v2463_v51, %v2453_v25  ;;  %v727_v12 = vpop.xlane.xlu0 %726 }
 0x481   :  { %2464 = vrcp.f32 %v727_v12  ;;  %v772_v54 = vpop.f32.mrf.mxu1 }
 0x482   :  { %v749_v58 = vpack.c.bf16 %v741_v53, %v741_v53  ;;  %2466 = vrcp.f32 %v718_v22 }
 0x484   :  { %2189 = vmatmul.msk.bf16.vlgmr.msrb.gmra.mxu2 %vm446_vm8, %v749_v58 }
 0x485   :  { %v793_v59 = vpop.f32.mrf.mxu2 }
 0x487   :  { %v2465_v60 = vpop.eup %2464 }
 0x488   :  { %v743_v61 = vmul.f32 %v2465_v60, %v2455_v28  ;;  %v2467_v29 = vpop.eup %2466 }
 0x489   :  { %v740_v0 = vmul.f32 %v2467_v29, %v3250_v62  ;;  %v2329_v29 = vld [vmem:[%s3542_s12] sm:$0xff] }
 0x48a   :  { %v751_v63 = vpack.c.bf16 %v743_v61, %v743_v61 }
 0x48b   :  { %v748_v3 = vpack.c.bf16 %v740_v0, %v740_v0 }
 0x48c   :  { %2191 = vmatmul.msk.bf16.vlgmr.msra.gmra.mxu0 %vm446_vm8, %v751_v63 }
 0x493   :  { %v838_v1 = vpop.permute.xlu0 %837 }
 0x494   :  { %v843_v2 = vsel %vm757_vm9, %v838_v1, 0 }
 0x495   :  { %852 = vmatpush.bf16.msrb.mxu1 %v843_v2 }
 0x498   :  { %2188 = vmatmul.msk.bf16.vlgmr.msrb.gmra.mxu1 %vm446_vm8, %v748_v3 }
 0x499   :  { %983 = vmatpush.bf16.msra.mxu1 %v2328_v21  ;;  %v2415_v21 = vld [vmem:[#allocation16] ss:$0 sm:$0xff] }
 0x49d   :  { %984 = vmatpush.bf16.msra.mxu1 %v2327_v23 }
 0x4e2   :  { %v833_v4 = vpop.f32.mrf.mxu0 }
 0x4e9   :  { %v812_v5 = vpop.f32.mrf.mxu3 }
 0x4ea   :  { %v2377_v6 = vpack.i.bf16 %v833_v4, %v812_v5  ;;  %v835_v7 = vpop.f32.mrf.mxu0 }
 0x4ec   :  { %2378 = vrot.lane.b32.xlu0 %v2377_v6, %s2940_s19 }
 0x4f1   :  { %v814_v8 = vpop.f32.mrf.mxu3 }
 0x4f9   :  { %v896_v9 = vpop.f32.mrf.mxu3 }
 0x501   :  { %v898_v10 = vpop.f32.mrf.mxu3 }
 0x507   :  { %v875_v11 = vpop.f32.mrf.mxu2 }
 0x509   :  { %v917_v13 = vpop.f32.mrf.mxu0 }
 0x50a   :  { %v2387_v14 = vpack.i.bf16 %v917_v13, %v896_v9 }
 0x50c   :  { %2388 = vrot.lane.b32.xlu1 %v2387_v14, %s2955_s28 }
 0x50f   :  { %v877_v62 = vpop.f32.mrf.mxu2 }
 0x511   :  { %v919_v15 = vpop.f32.mrf.mxu0 }
 0x512   :  { %v2414_v15 = vld [vmem:[#allocation14] ss:$0 sm:$0xff] }
 0x515   :  { %v854_v18 = vpop.f32.mrf.mxu1 }
 0x516   :  { %v2382_v19 = vpack.i.bf16 %v875_v11, %v854_v18 }
 0x518   :  { %2383 = vrot.lane.b32.xlu2 %v2382_v19, %s2932_s23 }
 0x51d   :  { %v856_v20 = vpop.f32.mrf.mxu1 }
 0x55e   :  { %v2379_v24 = vpop.permute.xlu0 %2378 }
 0x55f   :  { %v2381_v26 = vunpack.i.h.bf16 %v2379_v24  ;;  %v2380_v27 = vunpack.i.l.bf16 %v2379_v24 }
 0x561   :  { %v946_v32 = vsel %vm446_vm8, %v791_v50, %v2381_v26  ;;  %v945_v22 = vsel %vm446_vm8, %v770_v49, %v2380_v27 }
 0x572   :  { %v2384_v25 = vpop.permute.xlu2 %2383 }
 0x573   :  { %v2386_v28 = vunpack.i.h.bf16 %v2384_v25  ;;  %v2385_v30 = vunpack.i.l.bf16 %v2384_v25 }
 0x575   :  { %v949_v35 = vsel %vm947_vm10, %v946_v32, %v2386_v28  ;;  %v948_v36 = vsel %vm947_vm10, %v945_v22, %v2385_v30  ;;  %v2334_v30 = vld [vmem:[%s3544_s14 + $0x18] sm:$0xff]  ;;  %v2332_v32 = vld [vmem:[%s3544_s14 + $0x8] sm:$0xff]  ;;  %v2331_v22 = vld [vmem:[%s3544_s14] sm:$0xff] }
 0x576   :  { %1150 = vmatpush.bf16.msra.mxu3 %v2334_v30 }
 0x57e   :  { %v2389_v31 = vpop.permute.xlu1 %2388 }
 0x57f   :  { %v2391_v33 = vunpack.i.h.bf16 %v2389_v31  ;;  %v2390_v34 = vunpack.i.l.bf16 %v2389_v31  ;;  %v2333_v31 = vld [vmem:[%s3544_s14 + $0x10] sm:$0xff] }
 0x580   :  { %1151 = vmatpush.bf16.msra.mxu3 %v2333_v31 }
 0x581   :  { %v951_v37 = vsel %vm950_vm11, %v948_v36, %v2390_v34  ;;  %v952_v38 = vsel %vm950_vm11, %v949_v35, %v2391_v33  ;;  %v2416_v33 = vld [vmem:[#allocation17] ss:$0 sm:$0xff] }
 0x582   :  { %v953_v39 = vpack.c.bf16 %v952_v38, %v951_v37 }
 0x584   :  { %2200 = vmatmul.msk.bf16.vlgmr.msra.gmra.mxu1 %vm311_vm0, %v953_v39  ;;  %1152 = vmatpush.bf16.msra.mxu3 %v2332_v32 }
 0x588   :  { %1153 = vmatpush.bf16.msra.mxu3 %v2331_v22 }
 0x601   :  { %v986_v41 = vpop.f32.mrf.mxu1 }
 0x602   :  { %v987_v42 = vadd.f32 %v2413_v40, %v986_v41 }
 0x604   :  { %v991_v43 = vadd.f32 %v987_v42, %v3166_v55 }
 0x606   :  { %v995_v17 = vsel %vm311_vm0, %v991_v43, 0.0 }
 0x607   :  { %996 = vadd.xlane.f32.xlu0 %v995_v17 }
 0x609   :  { %v988_v44 = vpop.f32.mrf.mxu1 }
 0x60a   :  { %v989_v45 = vadd.f32 %v2413_v40, %v988_v44 }
 0x60c   :  { %v992_v46 = vadd.f32 %v989_v45, %v3168_v56  ;;  %v2330_v56 = vld [vmem:[%s3542_s12 + $0x8] sm:$0xff] }
 0x60d   :  { %1079 = vmatpush.bf16.msra.mxu2 %v2330_v56 }
 0x60e   :  { %v998_v47 = vsel %vm311_vm0, %v992_v46, 0.0 }
 0x60f   :  { %999 = vadd.xlane.f32.xlu2 %v998_v47 }
 0x611   :  { %1080 = vmatpush.bf16.msra.mxu2 %v2329_v29 }
 0x67a   :  { %v997_v48 = vpop.xlane.xlu0 %996 }
 0x67b   :  { %v1001_v49 = vmul.f32 %v997_v48, %v3152_v16 }
 0x67d   :  { %v1003_v50 = vsub.f32 %v991_v43, %v1001_v49 }
 0x67f   :  { %v1005_v51 = vmul.f32 %v1003_v50, %v1003_v50 }
 0x681   :  { %v1007_v53 = vsel %vm311_vm0, %v1005_v51, 0.0 }
 0x682   :  { %v1000_v12 = vpop.xlane.xlu2 %999  ;;  %1008 = vadd.xlane.f32.xlu1 %v1007_v53 }
 0x683   :  { %v1002_v55 = vmul.f32 %v1000_v12, %v3152_v16 }
 0x685   :  { %v1004_v54 = vsub.f32 %v992_v46, %v1002_v55 }
 0x687   :  { %v1006_v58 = vmul.f32 %v1004_v54, %v1004_v54 }
 0x689   :  { %v1010_v59 = vsel %vm311_vm0, %v1006_v58, 0.0  ;;  %v2417_v58 = vld [vmem:[#allocation19] ss:$0 sm:$0xff] }
 0x68a   :  { %1011 = vadd.xlane.f32.xlu0 %v1010_v59 }
 0x6f5   :  { %v1009_v60 = vpop.xlane.xlu1 %1008 }
 0x6f6   :  { %v1013_v61 = vmul.f32 %v1009_v60, %v3152_v16 }
 0x6f8   :  { %v1015_v63 = vadd.f32 1e-12, %v1013_v61 }
 0x6fa   :  { %2468 = vrsqrt.f32 %v1015_v63  ;;  %vm1023_vm13 = vweird.f32 %v1015_v63 }
 0x6fd   :  { %v1012_v0 = vpop.xlane.xlu0 %1011 }
 0x6fe   :  { %v1014_v1 = vmul.f32 %v1012_v0, %v3152_v16 }
 0x700   :  { %v2469_v2 = vpop.eup %2468  ;;  %v1016_v3 = vadd.f32 1e-12, %v1014_v1 }
 0x701   :  { %v1018_v4 = vmul.f32 %v2469_v2, %v1015_v63  ;;  %vm1024_vm12 = vweird.f32 %v2469_v2 }
 0x702   :  { %2470 = vrsqrt.f32 %v1016_v3  ;;  %vm1025_vm14 = vmor %vm1023_vm13, %vm1024_vm12  ;;  %vm1033_vm1 = vweird.f32 %v1016_v3 }
 0x703   :  { %v1019_v5 = vmul.f32 %v2469_v2, %v1018_v4 }
 0x705   :  { %v1020_v6 = vmul.f32 0.5, %v1019_v5 }
 0x707   :  { %v1021_v7 = vsub.f32 1.5, %v1020_v6 }
 0x708   :  { %v2471_v8 = vpop.eup %2470 }
 0x709   :  { %v1022_v9 = vmul.f32 %v2469_v2, %v1021_v7  ;;  %v1028_v10 = vmul.f32 %v2471_v8, %v1016_v3  ;;  %vm1034_vm15 = vweird.f32 %v2471_v8 }
 0x70a   :  { %vm1035_vm2 = vmor %vm1033_vm1, %vm1034_vm15 }
 0x70b   :  { %v1029_v11 = vmul.f32 %v2471_v8, %v1028_v10  ;;  %v1026_v13 = vsel %vm1025_vm14, %v2469_v2, %v1022_v9 }
 0x70c   :  { %v1037_v18 = vmul.f32 %v1026_v13, %v1003_v50  ;;  %v2336_v13 = vld [vmem:[%s3568_s2 + $0x18] sm:$0xff] }
 0x70d   :  { %v1030_v14 = vmul.f32 0.5, %v1029_v11  ;;  %1250 = vmatpush.bf16.msrb.mxu0 %v2336_v13 }
 0x70e   :  { %v1042_v23 = vmul.f32 %v2414_v15, %v1037_v18  ;;  %v2335_v18 = vld [vmem:[%s3568_s2 + $0x10] sm:$0xff] }
 0x70f   :  { %v1031_v62 = vsub.f32 1.5, %v1030_v14 }
 0x710   :  { %v1047_v26 = vadd.f32 %v2415_v21, %v1042_v23 }
 0x711   :  { %v1032_v19 = vmul.f32 %v2471_v8, %v1031_v62  ;;  %1251 = vmatpush.bf16.msrb.mxu0 %v2335_v18 }
 0x713   :  { %v1036_v20 = vsel %vm1035_vm2, %v2471_v8, %v1032_v19 }
 0x714   :  { %v1038_v24 = vmul.f32 %v1036_v20, %v1004_v54 }
 0x716   :  { %v1043_v25 = vmul.f32 %v2414_v15, %v1038_v24 }
 0x718   :  { %v1048_v27 = vadd.f32 %v2415_v21, %v1043_v25 }
 0x71a   :  { %v1049_v28 = vpack.c.bf16 %v1048_v27, %v1047_v26 }
 0x71c   :  { %2209 = vmatmul.msk.bf16.vlgmr.msra.gmra.mxu2 %vm311_vm0, %v1049_v28 }
 0x79f   :  { %v1082_v34 = vpop.f32.mrf.mxu2 }
 0x7a0   :  { %v1083_v35 = vadd.f32 %v2416_v33, %v1082_v34 }
 0x7a2   :  { %v1089_v36 = vmul.f32 0.044715, %v1083_v35  ;;  %v1087_v50 = vmul.f32 0.5, %v1083_v35 }
 0x7a4   :  { %v1091_v37 = vmul.f32 %v1089_v36, %v1083_v35 }
 0x7a6   :  { %v1093_v38 = vmul.f32 %v1091_v37, %v1083_v35 }
 0x7a7   :  { %v1084_v39 = vpop.f32.mrf.mxu2 }
 0x7a8   :  { %v1095_v40 = vadd.f32 %v1093_v38, %v1083_v35  ;;  %v1085_v41 = vadd.f32 %v2416_v33, %v1084_v39  ;;  %v2418_v35 = vld [vmem:[#allocation20] ss:$0 sm:$0xff]  ;;  %v2419_v39 = vld [vmem:[#allocation22] ss:$0 sm:$0xff] }
 0x7aa   :  { %v1090_v42 = vmul.f32 0.044715, %v1085_v41  ;;  %v1097_v43 = vmul.f32 0.7978846, %v1095_v40  ;;  %v1088_v51 = vmul.f32 0.5, %v1085_v41 }
 0x7ac   :  { %v1092_v17 = vmul.f32 %v1090_v42, %v1085_v41  ;;  %2472 = vtanh.f32 %v1097_v43 }
 0x7ae   :  { %v1094_v44 = vmul.f32 %v1092_v17, %v1085_v41 }
 0x7b0   :  { %v1096_v45 = vadd.f32 %v1094_v44, %v1085_v41 }
 0x7b2   :  { %v1098_v46 = vmul.f32 0.7978846, %v1096_v45  ;;  %v2473_v47 = vpop.eup %2472  ;;  %v2420_v45 = vld [vmem:[#allocation11 + $0x1] ss:$0 sm:$0xff] }
 0x7b3   :  { %v1101_v48 = vadd.f32 1.0, %v2473_v47 }
 0x7b4   :  { %2474 = vtanh.f32 %v1098_v46 }
 0x7b5   :  { %v1103_v12 = vmul.f32 %v1101_v48, %v1087_v50 }
 0x7ba   :  { %v2475_v49 = vpop.eup %2474 }
 0x7bb   :  { %v1102_v53 = vadd.f32 1.0, %v2475_v49 }
 0x7bd   :  { %v1104_v55 = vmul.f32 %v1102_v53, %v1088_v51 }
 0x7bf   :  { %v1105_v54 = vpack.c.bf16 %v1104_v55, %v1103_v12 }
 0x7c1   :  { %2226 = vmatmul.msk.bf16.vlgmr.msra.gmra.mxu3 %vm1142_vm3, %v1105_v54 }
 0x844   :  { %v1155_v59 = vpop.f32.mrf.mxu3 }
 0x845   :  { %v1156_v56 = vadd.f32 %v2417_v58, %v1155_v59 }
 0x847   :  { %v1160_v60 = vadd.f32 %v1156_v56, %v1047_v26 }
 0x849   :  { %v1164_v61 = vsel %vm311_vm0, %v1160_v60, 0.0 }
 0x84a   :  { %1165 = vadd.xlane.f32.xlu2 %v1164_v61 }
 0x84c   :  { %v1157_v63 = vpop.f32.mrf.mxu3 }
 0x84d   :  { %v1158_v29 = vadd.f32 %v2417_v58, %v1157_v63 }
 0x84f   :  { %v1161_v0 = vadd.f32 %v1158_v29, %v1048_v27 }
 0x851   :  { %v1167_v1 = vsel %vm311_vm0, %v1161_v0, 0.0 }
 0x852   :  { %1168 = vadd.xlane.f32.xlu1 %v1167_v1 }
 0x8bd   :  { %v1166_v2 = vpop.xlane.xlu2 %1165 }
 0x8be   :  { %v1170_v3 = vmul.f32 %v1166_v2, %v3152_v16 }
 0x8c0   :  { %v1172_v4 = vsub.f32 %v1160_v60, %v1170_v3 }
 0x8c2   :  { %v1174_v5 = vmul.f32 %v1172_v4, %v1172_v4 }
 0x8c4   :  { %v1176_v6 = vsel %vm311_vm0, %v1174_v5, 0.0 }
 0x8c5   :  { %v1169_v7 = vpop.xlane.xlu1 %1168  ;;  %1177 = vadd.xlane.f32.xlu0 %v1176_v6 }
 0x8c6   :  { %v1171_v8 = vmul.f32 %v1169_v7, %v3152_v16 }
 0x8c8   :  { %v1173_v9 = vsub.f32 %v1161_v0, %v1171_v8 }
 0x8ca   :  { %v1175_v10 = vmul.f32 %v1173_v9, %v1173_v9 }
 0x8cc   :  { %v1179_v11 = vsel %vm311_vm0, %v1175_v10, 0.0 }
 0x8cd   :  { %1180 = vadd.xlane.f32.xlu2 %v1179_v11 }
 0x938   :  { %v1178_v14 = vpop.xlane.xlu0 %1177 }
 0x939   :  { %v1182_v62 = vmul.f32 %v1178_v14, %v3152_v16 }
 0x93b   :  { %v1184_v15 = vadd.f32 1e-12, %v1182_v62 }
 0x93d   :  { %2476 = vrsqrt.f32 %v1184_v15  ;;  %vm1192_vm5 = vweird.f32 %v1184_v15 }
 0x940   :  { %v1181_v19 = vpop.xlane.xlu2 %1180 }
 0x941   :  { %v1183_v20 = vmul.f32 %v1181_v19, %v3152_v16 }
 0x943   :  { %v2477_v21 = vpop.eup %2476  ;;  %v1185_v23 = vadd.f32 1e-12, %v1183_v20 }
 0x944   :  { %v1187_v24 = vmul.f32 %v2477_v21, %v1184_v15  ;;  %vm1193_vm4 = vweird.f32 %v2477_v21 }
 0x945   :  { %2478 = vrsqrt.f32 %v1185_v23  ;;  %vm1194_vm6 = vmor %vm1192_vm5, %vm1193_vm4  ;;  %vm1202_vm12 = vweird.f32 %v1185_v23 }
 0x946   :  { %v1188_v25 = vmul.f32 %v2477_v21, %v1187_v24 }
 0x948   :  { %v1189_v26 = vmul.f32 0.5, %v1188_v25 }
 0x94a   :  { %v1190_v27 = vsub.f32 1.5, %v1189_v26 }
 0x94b   :  { %v2479_v28 = vpop.eup %2478 }
 0x94c   :  { %v1191_v30 = vmul.f32 %v2477_v21, %v1190_v27  ;;  %v1197_v31 = vmul.f32 %v2479_v28, %v1185_v23  ;;  %vm1203_vm7 = vweird.f32 %v2479_v28 }
 0x94d   :  { %vm1204_vm13 = vmor %vm1202_vm12, %vm1203_vm7  ;;  %vm2065_vm7 = vcmask 1040384  }
 0x94e   :  { %v1198_v32 = vmul.f32 %v2479_v28, %v1197_v31  ;;  %v1195_v22 = vsel %vm1194_vm6, %v2477_v21, %v1191_v30 }
 0x94f   :  { %v1206_v36 = vmul.f32 %v1195_v22, %v1172_v4 }
 0x950   :  { %v1199_v33 = vmul.f32 0.5, %v1198_v32 }
 0x951   :  { %v1211_v40 = vmul.f32 %v2418_v35, %v1206_v36 }
 0x952   :  { %v1200_v34 = vsub.f32 1.5, %v1199_v33 }
 0x953   :  { %v3339_v43 = vadd.f32 %v2419_v39, %v1211_v40 }
 0x954   :  { %v1201_v37 = vmul.f32 %v2479_v28, %v1200_v34 }
 0x956   :  { %v1205_v38 = vsel %vm1204_vm13, %v2479_v28, %v1201_v37 }
 0x957   :  { %v1207_v41 = vmul.f32 %v1205_v38, %v1173_v9 }
 0x959   :  { %v1212_v42 = vmul.f32 %v2418_v35, %v1207_v41 }
 0x95b   :  { %v3341_v17 = vadd.f32 %v2419_v39, %v1212_v42 }
 0x95d   :  { %v1218_v44 = vpack.c.bf16 %v3341_v17, %v3339_v43 }
 0x95f   :  { %2239 = vmatmul.msk.bf16.vlgmr.msrb.gmra.mxu0 %vm311_vm0, %v1218_v44 }
 0x9dc   :  { %v1253_v46 = vpop.f32.mrf.mxu0 }
 0x9dd   :  { %v1254_v47 = vadd.f32 %v2420_v45, %v1253_v46 }
 0x9df   :  { %1260 = vrot.lane.b32.xlu1 %v1254_v47, %s2952_s9  ;;  %v1278_v51 = vpack.c.bf16 %v1254_v47, %v1254_v47 }
 0x9e1   :  { %v1287_v12 = vunpack.c.l.b16 %v1278_v51 }
 0x9e3   :  { %v3354_v54 = vpack.c.b16 %v1287_v12, %v1287_v12 }
 0x9e4   :  { %v1255_v48 = vpop.f32.mrf.mxu0 }
 0x9e5   :  { %v1256_v49 = vadd.f32 %v2420_v45, %v1255_v48 }
 0x9e7   :  { %1268 = vrot.lane.b32.xlu2 %v1256_v49, %s2953_s11  ;;  %1262 = vrot.lane.b32.xlu0 %v1256_v49, %s2952_s9  ;;  %v1279_v50 = vpack.c.bf16 %v1256_v49, %v1256_v49 }
 0x9e8   :  { %1266 = vrot.lane.b32.xlu1 %v1254_v47, %s2953_s11 }
 0x9e9   :  { %v1311_v53 = vunpack.c.l.b16 %v1279_v50 }
 0x9eb   :  { %v3352_v55 = vpack.c.b16 %v1311_v53, %v1311_v53 }
 0x9ef   :  { %1274 = vrot.lane.b32.xlu2 %v1256_v49, %s2951_s13  ;;  %1272 = vrot.lane.b32.xlu0 %v1254_v47, %s2951_s13 }
 0x9f7   :  { %1313 = vrot.lane.b32.xlu0 %v3352_v55, %s2954_s3  ;;  %1289 = vrot.lane.b32.xlu2 %v3354_v54, %s2954_s3 }
 0xa41   :  { %v1269_v58 = vpop.permute.xlu2 %1268 }
 0xa42   :  { %v1283_v0 = vpack.c.bf16 %v1269_v58, %v1269_v58 }
 0xa44   :  { %v1407_v3 = vunpack.c.l.b16 %v1283_v0 }
 0xa46   :  { %v3366_v7 = vpack.c.b16 %v1407_v3, %v1407_v3 }
 0xa49   :  { %v1275_v59 = vpop.permute.xlu2 %1274 }
 0xa4a   :  { %v1285_v8 = vpack.c.bf16 %v1275_v59, %v1275_v59 }
 0xa4c   :  { %v1455_v13 = vunpack.c.l.b16 %v1285_v8 }
 0xa4e   :  { %v3374_v18 = vpack.c.b16 %v1455_v13, %v1455_v13 }
 0xa51   :  { %v1261_v56 = vpop.permute.xlu1 %1260  ;;  %v1290_v60 = vpop.permute.xlu2 %1289 }
 0xa52   :  { %v1280_v61 = vpack.c.bf16 %v1261_v56, %v1261_v56  ;;  %v1295_v63 = vsel %vm446_vm8, %v1290_v60, 0 }
 0xa53   :  { %1304 = vmatpush.bf16.xpose.msrb.mxu1 %v1295_v63 }
 0xa54   :  { %v1335_v29 = vunpack.c.l.b16 %v1280_v61 }
 0xa56   :  { %v3361_v1 = vpack.c.b16 %v1335_v29, %v1335_v29 }
 0xa58   :  { %1337 = vrot.lane.b32.xlu1 %v3361_v1, %s2954_s3 }
 0xa59   :  { %v1263_v2 = vpop.permute.xlu0 %1262 }
 0xa5a   :  { %v1281_v4 = vpack.c.bf16 %v1263_v2, %v1263_v2  ;;  %2240 = vmatmul.msk.bf16.vlgmr.msrb.gmra.mxu1 %vm446_vm8, %v1278_v51  ;;  %v1267_v5 = vpop.permute.xlu1 %1266 }
 0xa5b   :  { %v1282_v10 = vpack.c.bf16 %v1267_v5, %v1267_v5 }
 0xa5c   :  { %v1359_v6 = vunpack.c.l.b16 %v1281_v4 }
 0xa5d   :  { %v1383_v14 = vunpack.c.l.b16 %v1282_v10 }
 0xa5e   :  { %v3368_v9 = vpack.c.b16 %v1359_v6, %v1359_v6 }
 0xa5f   :  { %v3376_v19 = vpack.c.b16 %v1383_v14, %v1383_v14 }
 0xa60   :  { %1361 = vrot.lane.b32.xlu0 %v3368_v9, %s2954_s3  ;;  %1409 = vrot.lane.b32.xlu1 %v3366_v7, %s2954_s3 }
 0xa61   :  { %v1273_v11 = vpop.permute.xlu0 %1272 }
 0xa62   :  { %v1284_v62 = vpack.c.bf16 %v1273_v11, %v1273_v11 }
 0xa64   :  { %v1431_v15 = vunpack.c.l.b16 %v1284_v62 }
 0xa66   :  { %v3378_v20 = vpack.c.b16 %v1431_v15, %v1431_v15 }
 0xa68   :  { %1457 = vrot.lane.b32.xlu1 %v3374_v18, %s2954_s3  ;;  %1385 = vrot.lane.b32.xlu0 %v3376_v19, %s2954_s3 }
 0xa69   :  { %1433 = vrot.lane.b32.xlu2 %v3378_v20, %s2954_s3  ;;  %v1314_v21 = vpop.permute.xlu0 %1313 }
 0xa6a   :  { %v1319_v23 = vsel %vm446_vm8, %v1314_v21, 0 }
 0xa6b   :  { %1328 = vmatpush.bf16.xpose.msrb.mxu2 %v1319_v23 }
 0xa72   :  { %2241 = vmatmul.msk.bf16.vlgmr.msrb.gmra.mxu2 %vm446_vm8, %v1279_v50 }
 0xac3   :  { %v1434_v24 = vpop.permute.xlu2 %1433 }
 0xac4   :  { %v1439_v27 = vsel %vm446_vm8, %v1434_v24, 0 }
 0xaca   :  { %v1338_v25 = vpop.permute.xlu1 %1337 }
 0xacb   :  { %v1343_v26 = vsel %vm446_vm8, %v1338_v25, 0 }
 0xacc   :  { %1352 = vmatpush.bf16.xpose.msrb.mxu3 %v1343_v26 }
 0xad2   :  { %v1362_v28 = vpop.permute.xlu0 %1361  ;;  %v1410_v30 = vpop.permute.xlu1 %1409 }
 0xad3   :  { %v1367_v31 = vsel %vm446_vm8, %v1362_v28, 0  ;;  %v1415_v32 = vsel %vm446_vm8, %v1410_v30, 0  ;;  %2242 = vmatmul.msk.bf16.vlgmr.msrb.gmra.mxu3 %vm446_vm8, %v1280_v61  ;;  %v2526_v30 = vld [vmem:[#allocation7 + $0x1] ss:$0 sm:$0xff] }
 0xad4   :  { %1448 = vmatpush.bf16.xpose.msra.mxu3 %v1439_v27  ;;  %1376 = vmatpush.bf16.xpose.msra.mxu0 %v1367_v31 }
 0xad5   :  { %1424 = vmatpush.bf16.xpose.msra.mxu2 %v1415_v32 }
 0xad7   :  { %v1306_v22 = vpop.f32.mrf.mxu1 }
 0xad8   :  { %v1478_v33 = vmul.f32 0.35355338, %v1306_v22 }
 0xada   :  { %v1386_v34 = vpop.permute.xlu0 %1385  ;;  %v1458_v35 = vpop.permute.xlu1 %1457  ;;  %v1486_v36 = vadd.f32 %v3226_v57, %v1478_v33 }
 0xadb   :  { %v1391_v37 = vsel %vm446_vm8, %v1386_v34, 0  ;;  %v1463_v38 = vsel %vm446_vm8, %v1458_v35, 0  ;;  %2243 = vmatmul.msk.bf16.vlgmr.msra.gmra.mxu0 %vm446_vm8, %v1281_v4 }
 0xadc   :  { %2245 = vmatmul.msk.bf16.vlgmr.msra.gmra.mxu2 %vm446_vm8, %v1283_v0  ;;  %1400 = vmatpush.bf16.xpose.msra.mxu1 %v1391_v37  ;;  %v1494_v39 = vsel %vm446_vm8, %v1486_v36, -inf }
 0xadd   :  { %1472 = vmatpush.bf16.xpose.msrb.mxu0 %v1463_v38  ;;  %1495 = vmax.xlane.f32.xlu1 %v1494_v39 }
 0xadf   :  { %v1308_v40 = vpop.f32.mrf.mxu1 }
 0xae3   :  { %2244 = vmatmul.msk.bf16.vlgmr.msra.gmra.mxu1 %vm446_vm8, %v1282_v10  ;;  %2246 = vmatmul.msk.bf16.vlgmr.msra.gmra.mxu3 %vm446_vm8, %v1284_v62 }
 0xaeb   :  { %2247 = vmatmul.msk.bf16.vlgmr.msrb.gmra.mxu0 %vm446_vm8, %v1285_v8 }
 0xaf5   :  { %v1330_v41 = vpop.f32.mrf.mxu2 }
 0xaf6   :  { %v1479_v42 = vmul.f32 0.35355338, %v1330_v41  ;;  %1590 = vrot.lane.b32.xlu1 %v3354_v54, %s2948_s24 }
 0xaf8   :  { %v1487_v44 = vadd.f32 %v3224_v52, %v1479_v42 }
 0xafa   :  { %v1497_v45 = vsel %vm446_vm8, %v1487_v44, -inf }
 0xafb   :  { %1498 = vmax.xlane.f32.xlu2 %v1497_v45 }
 0xafd   :  { %v1332_v46 = vpop.f32.mrf.mxu2 }
 0xb50   :  { %v1496_v58 = vpop.xlane.xlu1 %1495 }
 0xb56   :  { %v1354_v47 = vpop.f32.mrf.mxu3 }
 0xb57   :  { %v1480_v48 = vmul.f32 0.35355338, %v1354_v47 }
 0xb58   :  { %v1378_v49 = vpop.f32.mrf.mxu0 }
 0xb59   :  { %v1488_v50 = vadd.f32 %v3226_v57, %v1480_v48  ;;  %v1481_v61 = vmul.f32 0.35355338, %v1378_v49 }
 0xb5b   :  { %v1500_v51 = vsel %vm446_vm8, %v1488_v50, -inf  ;;  %v1489_v10 = vadd.f32 %v3224_v52, %v1481_v61  ;;  %v1518_v52 = vsub.f32 %v1486_v36, %v1496_v58 }
 0xb5c   :  { %1501 = vmax.xlane.f32.xlu0 %v1500_v51 }
 0xb5d   :  { %v1503_v13 = vsel %vm446_vm8, %v1489_v10, -inf  ;;  %v1526_v25 = vmul.f32 1.442695, %v1518_v52 }
 0xb5e   :  { %v1356_v53 = vpop.f32.mrf.mxu3 }
 0xb5f   :  { %v1426_v12 = vpop.f32.mrf.mxu2 }
 0xb60   :  { %v1380_v59 = vpop.f32.mrf.mxu0  ;;  %v1402_v56 = vpop.f32.mrf.mxu1  ;;  %v1483_v27 = vmul.f32 0.35355338, %v1426_v12 }
 0xb61   :  { %v1482_v54 = vmul.f32 0.35355338, %v1402_v56 }
 0xb63   :  { %v1490_v60 = vadd.f32 %v3226_v57, %v1482_v54 }
 0xb65   :  { %v1506_v63 = vsel %vm446_vm8, %v1490_v60, -inf }
 0xb66   :  { %1507 = vmax.xlane.f32.xlu2 %v1506_v63  ;;  %v1450_v0 = vpop.f32.mrf.mxu3 }
 0xb67   :  { %v1428_v29 = vpop.f32.mrf.mxu2  ;;  %v1484_v2 = vmul.f32 0.35355338, %v1450_v0 }
 0xb68   :  { %v1474_v3 = vpop.f32.mrf.mxu0  ;;  %v1591_v4 = vpop.permute.xlu1 %1590 }
 0xb69   :  { %v1596_v5 = vsel %vm757_vm9, %v1591_v4, 0  ;;  %v1404_v6 = vpop.f32.mrf.mxu1  ;;  %v1492_v8 = vadd.f32 %v3226_v57, %v1484_v2  ;;  %v1485_v31 = vmul.f32 0.35355338, %v1474_v3 }
 0xb6a   :  { %1605 = vmatpush.bf16.msrb.mxu1 %v1596_v5 }
 0xb6b   :  { %v1512_v11 = vsel %vm446_vm8, %v1492_v8, -inf  ;;  %v1493_v22 = vadd.f32 %v2526_v30, %v1485_v31 }
 0xb6c   :  { %1513 = vmax.xlane.f32.xlu1 %v1512_v11 }
 0xb6d   :  { %v1515_v33 = vsel %vm446_vm8, %v1493_v22, -inf }
 0xb6e   :  { %1504 = vmax.xlane.f32.xlu2 %v1503_v13  ;;  %v1452_v14 = vpop.f32.mrf.mxu3  ;;  %v1499_v62 = vpop.xlane.xlu2 %1498 }
 0xb6f   :  { %v1519_v15 = vsub.f32 %v1487_v44, %v1499_v62 }
 0xb70   :  { %1632 = vrot.lane.b32.xlu0 %v3361_v1, %s2948_s24  ;;  %v1476_v21 = vpop.f32.mrf.mxu0  ;;  %v1491_v1 = vadd.f32 %v2526_v30, %v1483_v27 }
 0xb71   :  { %v1528_v23 = vmul.f32 1.442695, %v1519_v15 }
 0xb72   :  { %v1509_v32 = vsel %vm446_vm8, %v1491_v1, -inf }
 0xb73   :  { %2480 = vpow2.f32 %v1528_v23 }
 0xb74   :  { %2482 = vpow2.f32 %v1526_v25 }
 0xb79   :  { %v2481_v24 = vpop.eup %2480 }
 0xb7a   :  { %v1545_v57 = vsel %vm446_vm8, %v2481_v24, 0.0  ;;  %v2483_v26 = vpop.eup %2482 }
 0xb7b   :  { %1546 = vadd.xlane.f32.xlu1 %v1545_v57  ;;  %v1542_v28 = vsel %vm446_vm8, %v2483_v26, 0.0 }
 0xb86   :  { %1611 = vrot.lane.b32.xlu2 %v3352_v55, %s2948_s24 }
 0xb9a   :  { %1543 = vadd.xlane.f32.xlu0 %v1542_v28 }
 0xba2   :  { %1510 = vmax.xlane.f32.xlu0 %v1509_v32 }
 0xbaa   :  { %1516 = vmax.xlane.f32.xlu0 %v1515_v33 }
 0xbbe   :  { %1653 = vrot.lane.b32.xlu0 %v3368_v9, %s2948_s24 }
 0xbcf   :  { %v1502_v55 = vpop.xlane.xlu0 %1501 }
 0xbd0   :  { %v1520_v34 = vsub.f32 %v1488_v50, %v1502_v55 }
 0xbd2   :  { %v1530_v35 = vmul.f32 1.442695, %v1520_v34 }
 0xbd4   :  { %2484 = vpow2.f32 %v1530_v35 }
 0xbd9   :  { %v1508_v36 = vpop.xlane.xlu2 %1507 }
 0xbda   :  { %v3425_v37 = vpop.eup %2484  ;;  %v1522_v38 = vsub.f32 %v1490_v60, %v1508_v36 }
 0xbdb   :  { %v1548_v39 = vsel %vm446_vm8, %v3425_v37, 0.0 }
 0xbdc   :  { %v1534_v40 = vmul.f32 1.442695, %v1522_v38  ;;  %1549 = vadd.xlane.f32.xlu2 %v1548_v39 }
 0xbde   :  { %2486 = vpow2.f32 %v1534_v40 }
 0xbdf   :  { %v1514_v41 = vpop.xlane.xlu1 %1513 }
 0xbe0   :  { %v1524_v42 = vsub.f32 %v1492_v8, %v1514_v41 }
 0xbe1   :  { %v1505_v44 = vpop.xlane.xlu2 %1504 }
 0xbe2   :  { %v1538_v45 = vmul.f32 1.442695, %v1524_v42  ;;  %v1521_v46 = vsub.f32 %v1489_v10, %v1505_v44  ;;  %v1633_v9 = vpop.permute.xlu0 %1632 }
 0xbe3   :  { %v1638_v47 = vsel %vm757_vm9, %v1633_v9, 0 }
 0xbe4   :  { %v3430_v48 = vpop.eup %2486  ;;  %2488 = vpow2.f32 %v1538_v45  ;;  %v1532_v49 = vmul.f32 1.442695, %v1521_v46  ;;  %1647 = vmatpush.bf16.msrb.mxu3 %v1638_v47 }
 0xbe5   :  { %v1554_v50 = vsel %vm446_vm8, %v3430_v48, 0.0 }
 0xbe6   :  { %2490 = vpow2.f32 %v1532_v49  ;;  %1555 = vadd.xlane.f32.xlu1 %v1554_v50 }
 0xbe9   :  { %v1612_v51 = vpop.permute.xlu2 %1611 }
 0xbea   :  { %v2489_v53 = vpop.eup %2488  ;;  %v1617_v12 = vsel %vm757_vm9, %v1612_v51, 0 }
 0xbeb   :  { %1626 = vmatpush.bf16.msrb.mxu2 %v1617_v12  ;;  %v1560_v58 = vsel %vm446_vm8, %v2489_v53, 0.0 }
 0xbec   :  { %v2491_v59 = vpop.eup %2490  ;;  %1561 = vadd.xlane.f32.xlu0 %v1560_v58 }
 0xbed   :  { %v1551_v56 = vsel %vm446_vm8, %v2491_v59, 0.0 }
 0xbee   :  { %v1547_v54 = vpop.xlane.xlu1 %1546  ;;  %1552 = vadd.xlane.f32.xlu1 %v1551_v56 }
 0xbef   :  { %2492 = vrcp.f32 %v1547_v54 }
 0xbf5   :  { %v2493_v60 = vpop.eup %2492 }
 0xbf6   :  { %v1575_v61 = vmul.f32 %v2493_v60, %v2481_v24 }
 0xbf8   :  { %v1583_v63 = vpack.c.bf16 %v1575_v61, %v1575_v61 }
 0xbfa   :  { %2249 = vmatmul.msk.bf16.vlgmr.msrb.gmra.mxu2 %vm446_vm8, %v1583_v63 }
 0xc00   :  { %1716 = vrot.lane.b32.xlu0 %v3378_v20, %s2948_s24 }
 0xc07   :  { %1674 = vrot.lane.b32.xlu1 %v3376_v19, %s2948_s24 }
 0xc08   :  { %1737 = vrot.lane.b32.xlu0 %v3374_v18, %s2948_s24 }
 0xc0d   :  { %v1544_v29 = vpop.xlane.xlu0 %1543 }
 0xc0e   :  { %2494 = vrcp.f32 %v1544_v29 }
 0xc14   :  { %v2495_v0 = vpop.eup %2494 }
 0xc15   :  { %v1574_v2 = vmul.f32 %v2495_v0, %v2483_v26  ;;  %v1511_v3 = vpop.xlane.xlu0 %1510 }
 0xc16   :  { %v1523_v4 = vsub.f32 %v1491_v1, %v1511_v3 }
 0xc17   :  { %v1582_v5 = vpack.c.bf16 %v1574_v2, %v1574_v2 }
 0xc18   :  { %v1536_v6 = vmul.f32 1.442695, %v1523_v4 }
 0xc19   :  { %2248 = vmatmul.msk.bf16.vlgmr.msrb.gmra.mxu1 %vm446_vm8, %v1582_v5 }
 0xc1a   :  { %2496 = vpow2.f32 %v1536_v6  ;;  %v2338_v6 = vld [vmem:[%s3538_s8 + $0x18] sm:$0xff] }
 0xc1d   :  { %v1517_v8 = vpop.xlane.xlu0 %1516 }
 0xc1e   :  { %v1525_v10 = vsub.f32 %v1493_v22, %v1517_v8  ;;  %v2337_v8 = vld [vmem:[%s3538_s8 + $0x10] sm:$0xff] }
 0xc20   :  { %v2497_v20 = vpop.eup %2496  ;;  %v1540_v11 = vmul.f32 1.442695, %v1525_v10 }
 0xc21   :  { %v1557_v19 = vsel %vm446_vm8, %v2497_v20, 0.0 }
 0xc22   :  { %2498 = vpow2.f32 %v1540_v11  ;;  %1558 = vadd.xlane.f32.xlu2 %v1557_v19 }
 0xc28   :  { %v2499_v18 = vpop.eup %2498 }
 0xc29   :  { %v1563_v13 = vsel %vm446_vm8, %v2499_v18, 0.0 }
 0xc2a   :  { %1564 = vadd.xlane.f32.xlu2 %v1563_v13 }
 0xc30   :  { %v1654_v14 = vpop.permute.xlu0 %1653 }
 0xc31   :  { %v1659_v62 = vsel %vm757_vm9, %v1654_v14, 0 }
 0xc32   :  { %1668 = vmatpush.bf16.msra.mxu0 %v1659_v62 }
 0xc42   :  { %1695 = vrot.lane.b32.xlu2 %v3366_v7, %s2948_s24 }
 0xc4f   :  { %v1550_v15 = vpop.xlane.xlu2 %1549 }
 0xc50   :  { %2500 = vrcp.f32 %v1550_v15 }
 0xc56   :  { %v2501_v21 = vpop.eup %2500 }
 0xc57   :  { %v1576_v23 = vmul.f32 %v2501_v21, %v3425_v37 }
 0xc59   :  { %v1584_v24 = vpack.c.bf16 %v1576_v23, %v1576_v23  ;;  %v1556_v57 = vpop.xlane.xlu1 %1555 }
 0xc5b   :  { %2250 = vmatmul.msk.bf16.vlgmr.msrb.gmra.mxu3 %vm446_vm8, %v1584_v24 }
 0xc5f   :  { %v1562_v25 = vpop.xlane.xlu0 %1561 }
 0xc61   :  { %v1553_v52 = vpop.xlane.xlu1 %1552 }
 0xc62   :  { %2502 = vrcp.f32 %v1553_v52 }
 0xc63   :  { %2504 = vrcp.f32 %v1562_v25 }
 0xc64   :  { %2506 = vrcp.f32 %v1556_v57 }
 0xc68   :  { %v2503_v26 = vpop.eup %2502 }
 0xc69   :  { %v1577_v27 = vmul.f32 %v2503_v26, %v2491_v59  ;;  %v2505_v30 = vpop.eup %2504 }
 0xc6a   :  { %v1580_v7 = vmul.f32 %v2505_v30, %v2489_v53  ;;  %v2507_v32 = vpop.eup %2506 }
 0xc6b   :  { %v1585_v28 = vpack.c.bf16 %v1577_v27, %v1577_v27  ;;  %v1578_v33 = vmul.f32 %v2507_v32, %v3430_v48  ;;  %v2421_v27 = vld [vmem:[#allocation13 + $0x1] ss:$0 sm:$0xff] }
 0xc6c   :  { %v1588_v22 = vpack.c.bf16 %v1580_v7, %v1580_v7 }
 0xc6d   :  { %2251 = vmatmul.msk.bf16.vlgmr.msra.gmra.mxu0 %vm446_vm8, %v1585_v28  ;;  %v1586_v37 = vpack.c.bf16 %v1578_v33, %v1578_v33 }
 0xc72   :  { %v1717_v1 = vpop.permute.xlu0 %1716 }
 0xc73   :  { %v1722_v31 = vsel %vm757_vm9, %v1717_v1, 0 }
 0xc74   :  { %1731 = vmatpush.bf16.msra.mxu3 %v1722_v31 }
 0xc77   :  { %2254 = vmatmul.msk.bf16.vlgmr.msra.gmra.mxu3 %vm446_vm8, %v1588_v22 }
 0xc79   :  { %v1675_v55 = vpop.permute.xlu1 %1674 }
 0xc7a   :  { %v1680_v34 = vsel %vm757_vm9, %v1675_v55, 0  ;;  %v1738_v35 = vpop.permute.xlu0 %1737 }
 0xc7b   :  { %v1743_v36 = vsel %vm757_vm9, %v1738_v35, 0  ;;  %1689 = vmatpush.bf16.msra.mxu1 %v1680_v34 }
 0xc7c   :  { %1752 = vmatpush.bf16.msrb.mxu0 %v1743_v36 }
 0xc7d   :  { %v1628_v38 = vpop.f32.mrf.mxu2 }
 0xc7e   :  { %2252 = vmatmul.msk.bf16.vlgmr.msra.gmra.mxu1 %vm446_vm8, %v1586_v37 }
 0xc7f   :  { %1820 = vmatpush.bf16.msrb.mxu1 %v2338_v6 }
 0xc83   :  { %1821 = vmatpush.bf16.msrb.mxu1 %v2337_v8 }
 0xc85   :  { %v1630_v39 = vpop.f32.mrf.mxu2 }
 0xc95   :  { %v1559_v40 = vpop.xlane.xlu2 %1558 }
 0xc96   :  { %v1607_v41 = vpop.f32.mrf.mxu1  ;;  %2508 = vrcp.f32 %v1559_v40 }
 0xc9c   :  { %v2509_v45 = vpop.eup %2508 }
 0xc9d   :  { %v1565_v42 = vpop.xlane.xlu2 %1564  ;;  %v1579_v9 = vmul.f32 %v2509_v45, %v2497_v20 }
 0xc9e   :  { %2510 = vrcp.f32 %v1565_v42  ;;  %v1609_v44 = vpop.f32.mrf.mxu1 }
 0xc9f   :  { %v1587_v51 = vpack.c.bf16 %v1579_v9, %v1579_v9 }
 0xca4   :  { %v2511_v46 = vpop.eup %2510 }
 0xca5   :  { %v1581_v47 = vmul.f32 %v2511_v46, %v2499_v18  ;;  %v1696_v48 = vpop.permute.xlu2 %1695  ;;  %v2339_v46 = vld [vmem:[%s3542_s12 + $0x10] sm:$0xff] }
 0xca6   :  { %v1701_v49 = vsel %vm757_vm9, %v1696_v48, 0 }
 0xca7   :  { %v1589_v50 = vpack.c.bf16 %v1581_v47, %v1581_v47  ;;  %1710 = vmatpush.bf16.msra.mxu2 %v1701_v49 }
 0xca9   :  { %2255 = vmatmul.msk.bf16.vlgmr.msrb.gmra.mxu0 %vm446_vm8, %v1589_v50 }
 0xcaa   :  { %2253 = vmatmul.msk.bf16.vlgmr.msra.gmra.mxu2 %vm446_vm8, %v1587_v51 }
 0xcde   :  { %v1649_v53 = vpop.f32.mrf.mxu3 }
 0xce6   :  { %v1651_v12 = vpop.f32.mrf.mxu3 }
 0xcea   :  { %v1670_v58 = vpop.f32.mrf.mxu0 }
 0xceb   :  { %v2392_v59 = vpack.i.bf16 %v1670_v58, %v1649_v53 }
 0xced   :  { %2393 = vrot.lane.b32.xlu2 %v2392_v59, %s2940_s19 }
 0xcf2   :  { %v1672_v56 = vpop.f32.mrf.mxu0 }
 0xcfa   :  { %v1733_v54 = vpop.f32.mrf.mxu3 }
 0xcfb   :  { %v1691_v60 = vpop.f32.mrf.mxu1 }
 0xd02   :  { %v1735_v61 = vpop.f32.mrf.mxu3 }
 0xd03   :  { %v1693_v63 = vpop.f32.mrf.mxu1 }
 0xd26   :  { %v1754_v29 = vpop.f32.mrf.mxu0 }
 0xd27   :  { %v2402_v0 = vpack.i.bf16 %v1754_v29, %v1733_v54  ;;  %v2422_v29 = vld [vmem:[#allocation14 + $0x1] ss:$0 sm:$0xff] }
 0xd29   :  { %2403 = vrot.lane.b32.xlu0 %v2402_v0, %s2955_s28 }
 0xd2d   :  { %v1712_v2 = vpop.f32.mrf.mxu2 }
 0xd2e   :  { %v2397_v3 = vpack.i.bf16 %v1712_v2, %v1691_v60  ;;  %v1756_v4 = vpop.f32.mrf.mxu0 }
 0xd2f   :  { %v2423_v4 = vld [vmem:[#allocation16 + $0x1] ss:$0 sm:$0xff] }
 0xd30   :  { %2398 = vrot.lane.b32.xlu1 %v2397_v3, %s2932_s23 }
 0xd35   :  { %v1714_v5 = vpop.f32.mrf.mxu2 }
 0xd47   :  { %v2394_v10 = vpop.permute.xlu2 %2393 }
 0xd48   :  { %v2396_v20 = vunpack.i.h.bf16 %v2394_v10  ;;  %v2395_v11 = vunpack.i.l.bf16 %v2394_v10 }
 0xd4a   :  { %v1783_v62 = vsel %vm446_vm8, %v1628_v38, %v2396_v20  ;;  %v1782_v15 = vsel %vm446_vm8, %v1607_v41, %v2395_v11 }
 0xd9b   :  { %v2404_v19 = vpop.permute.xlu0 %2403 }
 0xd9c   :  { %v2406_v21 = vunpack.i.h.bf16 %v2404_v19  ;;  %v2405_v23 = vunpack.i.l.bf16 %v2404_v19  ;;  %v2344_v19 = vld [vmem:[%s3544_s14 + $0x38] sm:$0xff] }
 0xd9d   :  { %1992 = vmatpush.bf16.msrb.mxu3 %v2344_v19 }
 0xda2   :  { %v2399_v18 = vpop.permute.xlu1 %2398 }
 0xda3   :  { %v2401_v13 = vunpack.i.h.bf16 %v2399_v18  ;;  %v2400_v14 = vunpack.i.l.bf16 %v2399_v18  ;;  %v2343_v18 = vld [vmem:[%s3544_s14 + $0x30] sm:$0xff] }
 0xda4   :  { %1993 = vmatpush.bf16.msrb.mxu3 %v2343_v18 }
 0xda5   :  { %v1784_v24 = vsel %vm947_vm10, %v1782_v15, %v2400_v14  ;;  %v1785_v57 = vsel %vm947_vm10, %v1783_v62, %v2401_v13  ;;  %v2342_v13 = vld [vmem:[%s3544_s14 + $0x28] sm:$0xff]  ;;  %v2341_v14 = vld [vmem:[%s3544_s14 + $0x20] sm:$0xff] }
 0xda6   :  { %v1786_v52 = vsel %vm950_vm11, %v1784_v24, %v2405_v23  ;;  %v1787_v25 = vsel %vm950_vm11, %v1785_v57, %v2406_v21  ;;  %v2424_v62 = vld [vmem:[#allocation17 + $0x1] ss:$0 sm:$0xff] }
 0xda7   :  { %v1788_v26 = vpack.c.bf16 %v1787_v25, %v1786_v52 }
 0xda8   :  { %1994 = vmatpush.bf16.msrb.mxu3 %v2342_v13 }
 0xda9   :  { %2268 = vmatmul.msk.bf16.vlgmr.msrb.gmra.mxu1 %vm311_vm0, %v1788_v26 }
 0xdac   :  { %1995 = vmatpush.bf16.msrb.mxu3 %v2341_v14 }
 0xe26   :  { %v1823_v28 = vpop.f32.mrf.mxu1 }
 0xe27   :  { %v1824_v30 = vadd.f32 %v2421_v27, %v1823_v28 }
 0xe29   :  { %v1828_v7 = vadd.f32 %v1824_v30, %v3339_v43 }
 0xe2b   :  { %v1834_v1 = vsel %vm311_vm0, %v1828_v7, 0.0 }
 0xe2c   :  { %1835 = vadd.xlane.f32.xlu2 %v1834_v1 }
 0xe2e   :  { %v1825_v31 = vpop.f32.mrf.mxu1 }
 0xe2f   :  { %v1826_v32 = vadd.f32 %v2421_v27, %v1825_v31 }
 0xe31   :  { %v1829_v22 = vadd.f32 %v1826_v32, %v3341_v17  ;;  %v2340_v17 = vld [vmem:[%s3542_s12 + $0x18] sm:$0xff] }
 0xe32   :  { %1920 = vmatpush.bf16.msrb.mxu2 %v2340_v17 }
 0xe33   :  { %v1837_v33 = vsel %vm311_vm0, %v1829_v22, 0.0 }
 0xe34   :  { %1838 = vadd.xlane.f32.xlu1 %v1837_v33 }
 0xe36   :  { %1921 = vmatpush.bf16.msrb.mxu2 %v2339_v46 }
 0xe9f   :  { %v1836_v55 = vpop.xlane.xlu2 %1835 }
 0xea0   :  { %v1840_v34 = vmul.f32 %v1836_v55, %v3152_v16 }
 0xea2   :  { %v1842_v35 = vsub.f32 %v1828_v7, %v1840_v34 }
 0xea4   :  { %v1844_v36 = vmul.f32 %v1842_v35, %v1842_v35 }
 0xea6   :  { %v1846_v37 = vsel %vm311_vm0, %v1844_v36, 0.0 }
 0xea7   :  { %v1839_v38 = vpop.xlane.xlu1 %1838  ;;  %1847 = vadd.xlane.f32.xlu0 %v1846_v37 }
 0xea8   :  { %v1841_v43 = vmul.f32 %v1839_v38, %v3152_v16 }
 0xeaa   :  { %v1843_v39 = vsub.f32 %v1829_v22, %v1841_v43  ;;  %v2425_v43 = vld [vmem:[#allocation19 + $0x1] ss:$0 sm:$0xff] }
 0xeac   :  { %v1845_v40 = vmul.f32 %v1843_v39, %v1843_v39 }
 0xeae   :  { %v1849_v41 = vsel %vm311_vm0, %v1845_v40, 0.0 }
 0xeaf   :  { %1850 = vadd.xlane.f32.xlu2 %v1849_v41 }
 0xf1a   :  { %v1848_v42 = vpop.xlane.xlu0 %1847 }
 0xf1b   :  { %v1852_v44 = vmul.f32 %v1848_v42, %v3152_v16 }
 0xf1d   :  { %v1854_v45 = vadd.f32 1e-12, %v1852_v44 }
 0xf1f   :  { %2512 = vrsqrt.f32 %v1854_v45  ;;  %vm1862_vm9 = vweird.f32 %v1854_v45 }
 0xf22   :  { %v1851_v9 = vpop.xlane.xlu2 %1850 }
 0xf23   :  { %v1853_v47 = vmul.f32 %v1851_v9, %v3152_v16 }
 0xf25   :  { %v2513_v48 = vpop.eup %2512  ;;  %v1855_v49 = vadd.f32 1e-12, %v1853_v47 }
 0xf26   :  { %v1857_v50 = vmul.f32 %v2513_v48, %v1854_v45  ;;  %vm1863_vm8 = vweird.f32 %v2513_v48 }
 0xf27   :  { %2514 = vrsqrt.f32 %v1855_v49  ;;  %vm1864_vm10 = vmor %vm1862_vm9, %vm1863_vm8  ;;  %vm1872_vm14 = vweird.f32 %v1855_v49 }
 0xf28   :  { %v1858_v51 = vmul.f32 %v2513_v48, %v1857_v50 }
 0xf2a   :  { %v1859_v53 = vmul.f32 0.5, %v1858_v51 }
 0xf2c   :  { %v1860_v12 = vsub.f32 1.5, %v1859_v53 }
 0xf2d   :  { %v2515_v58 = vpop.eup %2514 }
 0xf2e   :  { %v1861_v59 = vmul.f32 %v2513_v48, %v1860_v12  ;;  %v1867_v56 = vmul.f32 %v2515_v58, %v1855_v49  ;;  %vm1873_vm11 = vweird.f32 %v2515_v58 }
 0xf2f   :  { %vm1874_vm15 = vmor %vm1872_vm14, %vm1873_vm11 }
 0xf30   :  { %v1868_v54 = vmul.f32 %v2515_v58, %v1867_v56  ;;  %v1865_v60 = vsel %vm1864_vm10, %v2513_v48, %v1861_v59 }
 0xf31   :  { %v1876_v0 = vmul.f32 %v1865_v60, %v1842_v35  ;;  %v2346_v60 = vld [vmem:[%s3548_s18 + $0x8] sm:$0xff] }
 0xf32   :  { %v1869_v61 = vmul.f32 0.5, %v1868_v54  ;;  %2097 = vmatpush.bf16.msra.mxu0 %v2346_v60 }
 0xf33   :  { %v1881_v5 = vmul.f32 %v2422_v29, %v1876_v0 }
 0xf34   :  { %v1870_v63 = vsub.f32 1.5, %v1869_v61 }
 0xf35   :  { %v1886_v10 = vadd.f32 %v2423_v4, %v1881_v5 }
 0xf36   :  { %v1871_v2 = vmul.f32 %v2515_v58, %v1870_v63  ;;  %v2345_v63 = vld [vmem:[%s3548_s18] sm:$0xff] }
 0xf37   :  { %2098 = vmatpush.bf16.msra.mxu0 %v2345_v63 }
 0xf38   :  { %v1875_v3 = vsel %vm1874_vm15, %v2515_v58, %v1871_v2 }
 0xf39   :  { %v1877_v6 = vmul.f32 %v1875_v3, %v1843_v39 }
 0xf3b   :  { %v1882_v8 = vmul.f32 %v2422_v29, %v1877_v6 }
 0xf3d   :  { %v1887_v20 = vadd.f32 %v2423_v4, %v1882_v8 }
 0xf3f   :  { %v1888_v11 = vpack.c.bf16 %v1887_v20, %v1886_v10 }
 0xf41   :  { %2281 = vmatmul.msk.bf16.vlgmr.msrb.gmra.mxu2 %vm311_vm0, %v1888_v11 }
 0xfc4   :  { %v1923_v15 = vpop.f32.mrf.mxu2 }
 0xfc5   :  { %v1924_v21 = vadd.f32 %v2424_v62, %v1923_v15 }
 0xfc7   :  { %v1930_v23 = vmul.f32 0.044715, %v1924_v21  ;;  %v1928_v55 = vmul.f32 0.5, %v1924_v21 }
 0xfc9   :  { %v1932_v24 = vmul.f32 %v1930_v23, %v1924_v21 }
 0xfcb   :  { %v1934_v57 = vmul.f32 %v1932_v24, %v1924_v21  ;;  %v2427_v24 = vld [vmem:[#allocation22 + $0x1] ss:$0 sm:$0xff] }
 0xfcc   :  { %v1925_v52 = vpop.f32.mrf.mxu2 }
 0xfcd   :  { %v1936_v25 = vadd.f32 %v1934_v57, %v1924_v21  ;;  %v1926_v26 = vadd.f32 %v2424_v62, %v1925_v52 }
 0xfcf   :  { %v1931_v27 = vmul.f32 0.044715, %v1926_v26  ;;  %v1938_v28 = vmul.f32 0.7978846, %v1936_v25  ;;  %v1929_v34 = vmul.f32 0.5, %v1926_v26 }
 0xfd1   :  { %v1933_v30 = vmul.f32 %v1931_v27, %v1926_v26  ;;  %2516 = vtanh.f32 %v1938_v28 }
 0xfd3   :  { %v1935_v7 = vmul.f32 %v1933_v30, %v1926_v26 }
 0xfd5   :  { %v1937_v1 = vadd.f32 %v1935_v7, %v1926_v26  ;;  %v2348_v7 = vld [vmem:[#allocation25 + $0x8] sm:$0xff] }
 0xfd6   :  { %2135 = vmatpush.bf16.msra.mxu1 %v2348_v7 }
 0xfd7   :  { %v1939_v31 = vmul.f32 0.7978846, %v1937_v1  ;;  %v2517_v32 = vpop.eup %2516  ;;  %v2347_v1 = vld [vmem:[#allocation25] sm:$0xff] }
 0xfd8   :  { %v1942_v22 = vadd.f32 1.0, %v2517_v32 }
 0xfd9   :  { %2518 = vtanh.f32 %v1939_v31  ;;  %v2428_v31 = vld [vmem:[#allocation23] ss:$0 sm:$0xff] }
 0xfda   :  { %v1944_v36 = vmul.f32 %v1942_v22, %v1928_v55  ;;  %2136 = vmatpush.bf16.msra.mxu1 %v2347_v1 }
 0xfdf   :  { %v2519_v33 = vpop.eup %2518 }
 0xfe0   :  { %v1943_v35 = vadd.f32 1.0, %v2519_v33 }
 0xfe2   :  { %v1945_v37 = vmul.f32 %v1943_v35, %v1929_v34  ;;  %v2429_v35 = vld [vmem:[%s3551_s21] ss:$0 sm:$0xff] }
 0xfe4   :  { %v1946_v38 = vpack.c.bf16 %v1945_v37, %v1944_v36 }
 0xfe6   :  { %2306 = vmatmul.msk.bf16.vlgmr.msrb.gmra.mxu3 %vm1142_vm3, %v1946_v38 }
0x1069   :  { %v1997_v39 = vpop.f32.mrf.mxu3 }
0x106a   :  { %v1998_v40 = vadd.f32 %v2425_v43, %v1997_v39 }
0x106c   :  { %v2002_v41 = vadd.f32 %v1998_v40, %v1886_v10 }
0x106e   :  { %v2008_v17 = vsel %vm311_vm0, %v2002_v41, 0.0 }
0x106f   :  { %2009 = vadd.xlane.f32.xlu0 %v2008_v17 }
0x1071   :  { %v1999_v42 = vpop.f32.mrf.mxu3 }
0x1072   :  { %v2000_v44 = vadd.f32 %v2425_v43, %v1999_v42 }
0x1074   :  { %v2003_v45 = vadd.f32 %v2000_v44, %v1887_v20 }
0x1076   :  { %v2011_v46 = vsel %vm311_vm0, %v2003_v45, 0.0 }
0x1077   :  { %2012 = vadd.xlane.f32.xlu1 %v2011_v46 }
0x10e2   :  { %v2010_v9 = vpop.xlane.xlu0 %2009 }
0x10e3   :  { %v2014_v47 = vmul.f32 %v2010_v9, %v3152_v16 }
0x10e5   :  { %v2016_v48 = vsub.f32 %v2002_v41, %v2014_v47 }
0x10e7   :  { %v2018_v49 = vmul.f32 %v2016_v48, %v2016_v48 }
0x10e9   :  { %v2020_v50 = vsel %vm311_vm0, %v2018_v49, 0.0 }
0x10ea   :  { %v2013_v51 = vpop.xlane.xlu1 %2012  ;;  %2021 = vadd.xlane.f32.xlu1 %v2020_v50 }
0x10eb   :  { %v2015_v53 = vmul.f32 %v2013_v51, %v3152_v16 }
0x10ed   :  { %v2017_v12 = vsub.f32 %v2003_v45, %v2015_v53 }
0x10ef   :  { %v2019_v58 = vmul.f32 %v2017_v12, %v2017_v12 }
0x10f1   :  { %v2023_v59 = vsel %vm311_vm0, %v2019_v58, 0.0 }
0x10f2   :  { %2024 = vadd.xlane.f32.xlu2 %v2023_v59 }
0x115d   :  { %v2022_v56 = vpop.xlane.xlu1 %2021 }
0x115e   :  { %v2026_v54 = vmul.f32 %v2022_v56, %v3152_v16 }
0x1160   :  { %v2028_v61 = vadd.f32 1e-12, %v2026_v54 }
0x1162   :  { %2520 = vrsqrt.f32 %v2028_v61  ;;  %vm2036_vm2 = vweird.f32 %v2028_v61 }
0x1165   :  { %v2025_v29 = vpop.xlane.xlu2 %2024 }
0x1166   :  { %v2027_v0 = vmul.f32 %v2025_v29, %v3152_v16  ;;  %v2426_v16 = vld [vmem:[#allocation20 + $0x1] ss:$0 sm:$0xff] }
0x1168   :  { %v2521_v2 = vpop.eup %2520  ;;  %v2029_v3 = vadd.f32 1e-12, %v2027_v0 }
0x1169   :  { %v2031_v4 = vmul.f32 %v2521_v2, %v2028_v61  ;;  %vm2037_vm1 = vweird.f32 %v2521_v2 }
0x116a   :  { %2522 = vrsqrt.f32 %v2029_v3  ;;  %vm2038_vm3 = vmor %vm2036_vm2, %vm2037_vm1  ;;  %vm2046_vm5 = vweird.f32 %v2029_v3 }
0x116b   :  { %v2032_v5 = vmul.f32 %v2521_v2, %v2031_v4 }
0x116d   :  { %v2033_v6 = vmul.f32 0.5, %v2032_v5 }
0x116f   :  { %v2034_v8 = vsub.f32 1.5, %v2033_v6 }
0x1170   :  { %v2523_v10 = vpop.eup %2522 }
0x1171   :  { %v2041_v20 = vmul.f32 %v2523_v10, %v2029_v3  ;;  %v2035_v11 = vmul.f32 %v2521_v2, %v2034_v8  ;;  %vm2047_vm4 = vweird.f32 %v2523_v10 }
0x1172   :  { %vm2048_vm6 = vmor %vm2046_vm5, %vm2047_vm4 }
0x1173   :  { %v2042_v19 = vmul.f32 %v2523_v10, %v2041_v20  ;;  %v2039_v13 = vsel %vm2038_vm3, %v2521_v2, %v2035_v11 }
0x1174   :  { %v2050_v15 = vmul.f32 %v2039_v13, %v2016_v48 }
0x1175   :  { %v2043_v18 = vmul.f32 0.5, %v2042_v19 }
0x1176   :  { %v2055_v57 = vmul.f32 %v2426_v16, %v2050_v15 }
0x1177   :  { %v2044_v14 = vsub.f32 1.5, %v2043_v18 }
0x1178   :  { %v2060_v26 = vadd.f32 %v2427_v24, %v2055_v57 }
0x1179   :  { %v2045_v62 = vmul.f32 %v2523_v10, %v2044_v14 }
0x117b   :  { %v2049_v21 = vsel %vm2048_vm6, %v2523_v10, %v2045_v62 }
0x117c   :  { %v2051_v23 = vmul.f32 %v2049_v21, %v2017_v12 }
0x117e   :  { %v2056_v52 = vmul.f32 %v2426_v16, %v2051_v23 }
0x1180   :  { %v2061_v25 = vadd.f32 %v2427_v24, %v2056_v52 }
0x1182   :  { %v2063_v27 = vrot.slane %v2061_v25, 7 }
0x1184   :  { %v2066_v28 = vsel %vm2065_vm7, %v2060_v26, %v2063_v27 }
0x1185   :  { %v2067_v30 = vpack.c.bf16 %v2066_v28, %v2066_v28 }
0x1187   :  { %2315 = vmatmul.msk.bf16.vlgmr.msra.gmra.mxu0 %vm311_vm0, %v2067_v30 }
0x1204   :  { %v2100_v32 = vpop.f32.mrf.mxu0 }
0x1205   :  { %v2101_v22 = vadd.f32 %v2428_v31, %v2100_v32 }
0x1207   :  { %2524 = vtanh.f32 %v2101_v22 }
0x120c   :  { %v2102_v33 = vpop.f32.mrf.mxu0 }
0x120d   :  { %v2525_v55 = vpop.eup %2524 }
0x120e   :  { %v2105_v34 = vpack.c.bf16 %v2525_v55, %v2525_v55 }
0x1210   :  { %2324 = vmatmul.msk.bf16.vlgmr.msra.gmra.mxu1 %vm311_vm0, %v2105_v34 }
0x128d   :  { %v2138_v36 = vpop.f32.mrf.mxu1 }
0x128e   :  { %v2139_v37 = vadd.f32 %v2429_v35, %v2138_v36 }
0x1290   :  { %2142 = vst [vmem:[#allocation26] sm:$0x3] %v2139_v37 }
0x1291   :  { %2153 = dma.vmem_to_hbm [thread:$0]  %s2149_s6, 32, %s2151_s16, [#allocation4]  }
0x1295   :  { %v2140_v38 = vpop.f32.mrf.mxu1 }
0x1296   :  { %2927 = dma.done.wait [#allocation4], 32  }
0x1297   :  { %2928 = vsyncadd [#allocation4], 4294967264 }
0x1298   :  { %2158 = vsyncpa [#allocation3], 1 }
0x1299   :  { %2159 = vsyncpa [#allocation6], 1 }
0x129a   :  { %2160 = vsyncpa [#allocation9], 1 }
0x129b   :  { %2161 = vsyncpa [#allocation12], 1 }
0x129c   :  { %2162 = vsyncpa [#allocation15], 1 }
0x129d   :  { %2163 = vsyncpa [#allocation18], 1 }
0x129e   :  { %2164 = vsyncpa [#allocation21], 1 }
0x129f   :  { %2165 = vsyncpa [#allocation24], 1 }
0x12a0   :  { %2166 = vsyncpa [#allocation4], 1 }

</bundles_post_ra>
